<compile_context>
chip_gen: v7x
topology: tpu7x:2x2x1
jax: 0.10.0
libtpu: 0.0.40
codegen_flags: <defaults>
</compile_context>

<pallas_src>
import functools

import jax
import jax.numpy as jnp
from jax import lax
from jax.experimental import pallas as pl
from jax.experimental.pallas import tpu as pltpu


def _round_up(x, m):
    return (x + m - 1) // m * m


def _largest_divisor_leq(n, cap):
    cap = max(1, min(n, cap))
    for d in range(cap, 0, -1):
        if n % d == 0:
            return d
    return 1


@functools.lru_cache(maxsize=1)
def _vmem_plan():
    """Return (soft budget for tile sizing, vmem_limit_bytes) per generation."""
    try:
        cap = int(pltpu.get_tpu_info().vmem_capacity_bytes)
    except Exception:
        cap = 64 * 1024 * 1024                    # conservative: assume v7x-size
    if cap >= 128 * 1024 * 1024:                  # v5e / v6e (128 MiB VMEM)
        return 96 * 1024 * 1024, 112 * 1024 * 1024
    return 44 * 1024 * 1024, 56 * 1024 * 1024     # v7x (64 MiB VMEM per TC)


def _lstm_classifier_kernel(x_ref,     # (T_TILE, B_TILE, D)        bf16 time-major
                            wih_ref,   # (D, 4*HP)                  bf16
                            whh_ref,   # (HP, 4*HP)                 bf16
                            b_ref,     # (1, 4*HP)                  f32 (b_ih+b_hh)
                            wfc_ref,   # (HP, CP)                   bf16
                            bfc_ref,   # (1, CP)                    f32
                            out_ref,   # (B_TILE, CP)               f32 logits
                            xw_ref,    # scratch (T_TILE, B_TILE, 4*HP) bf16
                            h_ref,     # scratch (B_TILE, HP)       f32
                            c_ref):    # scratch (B_TILE, HP)       f32
    t_idx = pl.program_id(1)
    T_TILE, B_TILE, D = x_ref.shape
    HP = h_ref.shape[1]
    G = 4 * HP

    # h0 = c0 = 0 at the start of each batch block's time sweep.
    @pl.when(t_idx == 0)
    def _init():
        h_ref[...] = jnp.zeros_like(h_ref)
        c_ref[...] = jnp.zeros_like(c_ref)

    # ---- Hoisted time-parallel input projection: one big MXU matmul ----
    # f32 accumulation; bf16 store halves scratch VMEM + per-step vld traffic.
    x_flat = x_ref[...].reshape(T_TILE * B_TILE, D)
    proj = jnp.dot(x_flat, wih_ref[...], preferred_element_type=jnp.float32)
    xw_ref[...] = proj.reshape(T_TILE, B_TILE, G).astype(xw_ref.dtype)

    bias = b_ref[...]                   # (1, G) f32 — tiny, loop-invariant
    h = h_ref[...]                      # (B_TILE, HP) f32
    c = c_ref[...]                      # (B_TILE, HP) f32

    def _sigmoid(v):
        # sigmoid(v) = 0.5 * tanh(0.5 * v) + 0.5  -> single EUP op per element.
        return 0.5 * jnp.tanh(0.5 * v) + 0.5

    def step(tt, carry):
        h, c = carry
        g_x = xw_ref[tt].astype(jnp.float32)              # (B_TILE, G)
        # whh_ref is deliberately NOT hoisted into a live value: let the MXU
        # stream the weights from VMEM rather than pinning 32 bf16 vregs.
        rec = jnp.dot(h.astype(jnp.bfloat16), whh_ref[...],
                      preferred_element_type=jnp.float32)
        gates = g_x + rec + bias
        # Gate order matches nn.LSTM: [i, f, g, o]; slices are lane-aligned
        # because HP is a multiple of 128.
        i_g = _sigmoid(gates[:, 0 * HP:1 * HP])
        f_g = _sigmoid(gates[:, 1 * HP:2 * HP])
        g_g = jnp.tanh(gates[:, 2 * HP:3 * HP])
        o_g = _sigmoid(gates[:, 3 * HP:4 * HP])
        c = f_g * c + i_g * g_g
        h = o_g * jnp.tanh(c)
        return h, c

    unroll = True if T_TILE <= 8 else 8
    h, c = lax.fori_loop(0, T_TILE, step, (h, c), unroll=unroll)

    h_ref[...] = h
    c_ref[...] = c

    # fc head on the final hidden state; lane-dense (B_TILE, CP) store.
    @pl.when(t_idx == pl.num_programs(1) - 1)
    def _finalize():
        out_ref[...] = (
            jnp.dot(h.astype(jnp.bfloat16), wfc_ref[...],
                    preferred_element_type=jnp.float32)
            + bfc_ref[...]
        ).astype(out_ref.dtype)


@functools.partial(jax.jit, static_argnames=("hidden_size", "num_classes"))
def lstm_classifier_forward(x, params, *, hidden_size, num_classes):
    """x: (B, T, D) float32 (batch_first, like the PyTorch module)."""
    B, T, D = x.shape
    H, C = hidden_size, num_classes

    HP = _round_up(H, 128)          # lane-aligned gate width
    G = 4 * HP
    CP = _round_up(C, 128)          # lane-dense logits block

    # ---- generation-aware VMEM plan & tile sizing ----
    budget, vmem_limit = _vmem_plan()

    b_cap = 64 if HP >= 512 else 128
    B_TILE = min(_round_up(B, 8), b_cap)
    B_pad = _round_up(B, B_TILE)
    # Megacore (v7x): ensure the "parallel" batch axis has >= 2 blocks when
    # the batch is large enough to split, so the second TensorCore is used.
    if B_pad // B_TILE == 1 and B_pad >= 16:
        B_TILE = _round_up(B_pad // 2, 8)
        B_pad = _round_up(B, B_TILE)

    T_TILE = _largest_divisor_leq(T, 128)

    def _vmem_bytes(b_tile, t_tile):
        x_blocks = 2 * t_tile * b_tile * D * 2           # double-buffered bf16 x
        xw = t_tile * b_tile * G * 2                     # bf16 projection scratch
        weights = D * G * 2 + HP * G * 2 + G * 4 + HP * CP * 2 + CP * 4
        state = 2 * b_tile * HP * 4                      # h, c (f32)
        out = 2 * b_tile * CP * 4                        # double-buffered output
        internal = 2 * 1024 * 1024                       # Mosaic internal scratch
        return x_blocks + xw + weights + state + out + internal

    while _vmem_bytes(B_TILE, T_TILE) > budget:
        if T_TILE > 1:
            T_TILE = _largest_divisor_leq(T, T_TILE - 1)
        elif B_TILE > 8:
            B_TILE = max(8, _round_up(B_TILE // 2, 8))
            B_pad = _round_up(B, B_TILE)
        else:
            break

    # ---- layout prep (glue only; no kernel compute hoisted out) ----
    # One fused pass over x: transpose to time-major + bf16 cast + batch pad,
    # so the per-step slab in the kernel is contiguous and sublane-aligned.
    x_tm = jnp.transpose(x, (1, 0, 2)).astype(jnp.bfloat16)       # (T, B, D)
    x_tm = jnp.pad(x_tm, ((0, 0), (0, B_pad - B), (0, 0)))        # (T, B_pad, D)

    def _split_pad_T(w, in_dim):
        # (4H, in_dim) -> (in_dim, 4*HP): per-gate hidden dim zero-padded to HP.
        wg = w.reshape(4, H, in_dim)
        wg = jnp.pad(wg, ((0, 0), (0, HP - H), (0, 0)))
        return jnp.transpose(wg, (2, 0, 1)).reshape(in_dim, G)

    wih_t = _split_pad_T(params["w_ih"], D).astype(jnp.bfloat16)          # (D, G)
    whh_t = _split_pad_T(params["w_hh"], H)                               # (H, G)
    whh_t = jnp.pad(whh_t, ((0, HP - H), (0, 0))).astype(jnp.bfloat16)    # (HP, G)
    b_all = (params["b_ih"] + params["b_hh"]).reshape(4, H)
    b_all = jnp.pad(b_all, ((0, 0), (0, HP - H))).reshape(1, G)           # f32
    wfc_t = jnp.pad(params["w_fc"].T, ((0, HP - H), (0, CP - C)))         # (HP, CP)
    wfc_t = wfc_t.astype(jnp.bfloat16)
    bfc = jnp.pad(params["b_fc"], (0, CP - C)).reshape(1, CP)             # f32

    # NOTE: time MUST stay the innermost ("arbitrary") grid axis — the h/c
    # scratch carry and the last-step output store depend on this ordering.
    grid = (B_pad // B_TILE, T // T_TILE)     # (batch blocks, time blocks)

    out = pl.pallas_call(
        _lstm_classifier_kernel,
        out_shape=jax.ShapeDtypeStruct((B_pad, CP), jnp.float32),
        grid_spec=pltpu.PrefetchScalarGridSpec(
            num_scalar_prefetch=0,
            grid=grid,
            in_specs=[
                pl.BlockSpec((T_TILE, B_TILE, D), lambda b, t: (t, b, 0)),
                pl.BlockSpec((D, G), lambda b, t: (0, 0)),
                pl.BlockSpec((HP, G), lambda b, t: (0, 0)),
                pl.BlockSpec((1, G), lambda b, t: (0, 0)),
                pl.BlockSpec((HP, CP), lambda b, t: (0, 0)),
                pl.BlockSpec((1, CP), lambda b, t: (0, 0)),
            ],
            out_specs=pl.BlockSpec((B_TILE, CP), lambda b, t: (b, 0)),
            scratch_shapes=[
                pltpu.VMEM((T_TILE, B_TILE, G), jnp.bfloat16),   # x projection
                pltpu.VMEM((B_TILE, HP), jnp.float32),           # h state
                pltpu.VMEM((B_TILE, HP), jnp.float32),           # c state
            ],
        ),
        compiler_params=pltpu.CompilerParams(
            dimension_semantics=("parallel", "arbitrary"),       # batch, time
            vmem_limit_bytes=int(vmem_limit)),
    )(x_tm, wih_t, whh_t, b_all, wfc_t, bfc)

    return out[:B, :C]


def init_params(key, input_size, hidden_size, num_classes):
    """Deterministic init mirroring PyTorch's U(-1/sqrt(H), 1/sqrt(H))."""
    H, D, C = hidden_size, input_size, num_classes
    k = 1.0 / jnp.sqrt(jnp.float32(H))
    keys = jax.random.split(key, 6)
    u = lambda kk, shape: jax.random.uniform(kk, shape, jnp.float32, -k, k)
    return {
        "w_ih": u(keys[0], (4 * H, D)),
        "w_hh": u(keys[1], (4 * H, H)),
        "b_ih": u(keys[2], (4 * H,)),
        "b_hh": u(keys[3], (4 * H,)),
        "w_fc": u(keys[4], (C, H)),
        "b_fc": u(keys[5], (C,)),
    }


def _reference_forward(x, params, hidden_size):
    """Pure-JAX f32 reference of the PyTorch forward (for verification)."""
    B, T, D = x.shape
    H = hidden_size
    h = jnp.zeros((B, H), jnp.float32)
    c = jnp.zeros((B, H), jnp.float32)

    def cell(carry, xt):
        h, c = carry
        gates = xt @ params["w_ih"].T + params["b_ih"] \
              + h @ params["w_hh"].T + params["b_hh"]
        i = jax.nn.sigmoid(gates[:, 0 * H:1 * H])
        f = jax.nn.sigmoid(gates[:, 1 * H:2 * H])
        g = jnp.tanh(gates[:, 2 * H:3 * H])
        o = jax.nn.sigmoid(gates[:, 3 * H:4 * H])
        c = f * c + i * g
        h = o * jnp.tanh(c)
        return (h, c), None

    (h, c), _ = lax.scan(cell, (h, c), jnp.transpose(x, (1, 0, 2)))
    return h @ params["w_fc"].T + params["b_fc"]


if __name__ == "__main__":
    B, T, D, H, C = 2, 8, 16, 32, 4   # batch, seq, input_size, hidden, classes

    key = jax.random.PRNGKey(0)
    kx, kp = jax.random.split(key)
    x = jax.random.normal(kx, (B, T, D), jnp.float32)
    params = init_params(kp, D, H, C)

    out = lstm_classifier_forward(x, params, hidden_size=H, num_classes=C)
    out = jax.block_until_ready(out)

    ref = _reference_forward(x, params, H)
    assert out.shape == (B, C)
    # bf16 matmul operands (f32 accumulation/state) => loosened tolerance
    # (validated at T=8; error grows with sequence length).
    assert jnp.allclose(out, ref, atol=5e-2, rtol=5e-2), (
        f"mismatch vs reference, max abs err={float(jnp.max(jnp.abs(out - ref)))}")

    print("KERNEL_OK")
</pallas_src>

<mosaic_0001>
module attributes {stable_mosaic.version = 11 : i64} {
  func.func @_lstm_classifier_kernel(%arg0: i32, %arg1: i32, %arg2: memref<8x8x16xbf16, #tpu.memory_space<vmem>>, %arg3: memref<16x512xbf16, #tpu.memory_space<vmem>>, %arg4: memref<128x512xbf16, #tpu.memory_space<vmem>>, %arg5: memref<1x512xf32, #tpu.memory_space<vmem>>, %arg6: memref<128x128xbf16, #tpu.memory_space<vmem>>, %arg7: memref<1x128xf32, #tpu.memory_space<vmem>>, %arg8: memref<8x128xf32, #tpu.memory_space<vmem>>, %arg9: memref<8x8x512xbf16, #tpu.memory_space<vmem>>, %arg10: memref<8x128xf32, #tpu.memory_space<vmem>>, %arg11: memref<8x128xf32, #tpu.memory_space<vmem>>) attributes {dimension_semantics = [#tpu.dimension_semantics<parallel>, #tpu.dimension_semantics<arbitrary>], iteration_bounds = array<i64: 1, 1>, scalar_prefetch = 0 : i64, scratch_operands = 3 : i64, tpu.core_type = #tpu.core_type<tc>, window_params = [{transform_indices = @transform_0, window_bounds = array<i64: 8, 8, 16>}, {pipeline_mode = #tpu.pipeline_mode<synchronous>, transform_indices = @transform_1, window_bounds = array<i64: 16, 512>}, {pipeline_mode = #tpu.pipeline_mode<synchronous>, transform_indices = @transform_2, window_bounds = array<i64: 128, 512>}, {pipeline_mode = #tpu.pipeline_mode<synchronous>, transform_indices = @transform_3, window_bounds = array<i64: 1, 512>}, {pipeline_mode = #tpu.pipeline_mode<synchronous>, transform_indices = @transform_4, window_bounds = array<i64: 128, 128>}, {pipeline_mode = #tpu.pipeline_mode<synchronous>, transform_indices = @transform_5, window_bounds = array<i64: 1, 128>}, {transform_indices = @transform_6, window_bounds = array<i64: 8, 128>}]} {
    %c0_i32 = arith.constant 0 : i32
    %0 = arith.cmpi eq, %arg1, %c0_i32 : i32
    %1 = arith.extui %0 : i1 to i32
    %c0_i32_0 = arith.constant 0 : i32
    %2 = arith.cmpi ne, %1, %c0_i32_0 : i32
    scf.if %2 {
      %cst_133 = arith.constant 0.000000e+00 : f32
      %346 = vector.broadcast %cst_133 : f32 to vector<8x128xf32>
      %c0_134 = arith.constant 0 : index
      %c0_135 = arith.constant 0 : index
      %347 = vector.load %arg10[%c0_134, %c0_135] : memref<8x128xf32, #tpu.memory_space<vmem>>, vector<8x128xf32>
      tpu.vector_store %arg10[%c0_134, %c0_135], %346 {strides = array<i32>} : memref<8x128xf32, #tpu.memory_space<vmem>>, vector<8x128xf32>,
      %cst_136 = arith.constant 0.000000e+00 : f32
      %348 = vector.broadcast %cst_136 : f32 to vector<8x128xf32>
      %c0_137 = arith.constant 0 : index
      %c0_138 = arith.constant 0 : index
      %349 = vector.load %arg11[%c0_137, %c0_138] : memref<8x128xf32, #tpu.memory_space<vmem>>, vector<8x128xf32>
      tpu.vector_store %arg11[%c0_137, %c0_138], %348 {strides = array<i32>} : memref<8x128xf32, #tpu.memory_space<vmem>>, vector<8x128xf32>,
    } else {
    }
    %c0 = arith.constant 0 : index
    %c0_1 = arith.constant 0 : index
    %c0_2 = arith.constant 0 : index
    %3 = vector.load %arg2[%c0, %c0_1, %c0_2] : memref<8x8x16xbf16, #tpu.memory_space<vmem>>, vector<8x8x16xbf16>
    %4 = vector.shape_cast %3 : vector<8x8x16xbf16> to vector<64x16xbf16>
    %c0_3 = arith.constant 0 : index
    %c0_4 = arith.constant 0 : index
    %5 = vector.load %arg3[%c0_3, %c0_4] : memref<16x512xbf16, #tpu.memory_space<vmem>>, vector<16x512xbf16>
    %cst = arith.constant dense<0.000000e+00> : vector<64x512xf32>
    %6 = tpu.matmul %4, %5, %cst {dimension_numbers = #tpu.dot_dimension_numbers<[1], [0], [0], [1], [0, 0, 1, 1], [], []>} : vector<64x16xbf16>, vector<16x512xbf16>, vector<64x512xf32> -> vector<64x512xf32>
    %7 = vector.shape_cast %6 : vector<64x512xf32> to vector<8x8x512xf32>
    %8 = arith.truncf %7 : vector<8x8x512xf32> to vector<8x8x512xbf16>
    %c0_5 = arith.constant 0 : index
    %c0_6 = arith.constant 0 : index
    %c0_7 = arith.constant 0 : index
    %9 = vector.load %arg9[%c0_5, %c0_6, %c0_7] : memref<8x8x512xbf16, #tpu.memory_space<vmem>>, vector<8x8x512xbf16>
    tpu.vector_store %arg9[%c0_5, %c0_6, %c0_7], %8 {strides = array<i32>} : memref<8x8x512xbf16, #tpu.memory_space<vmem>>, vector<8x8x512xbf16>,
    %c0_8 = arith.constant 0 : index
    %c0_9 = arith.constant 0 : index
    %10 = vector.load %arg5[%c0_8, %c0_9] : memref<1x512xf32, #tpu.memory_space<vmem>>, vector<1x512xf32>
    %c0_10 = arith.constant 0 : index
    %c0_11 = arith.constant 0 : index
    %11 = vector.load %arg10[%c0_10, %c0_11] : memref<8x128xf32, #tpu.memory_space<vmem>>, vector<8x128xf32>
    %c0_12 = arith.constant 0 : index
    %c0_13 = arith.constant 0 : index
    %12 = vector.load %arg11[%c0_12, %c0_13] : memref<8x128xf32, #tpu.memory_space<vmem>>, vector<8x128xf32>
    %c0_i32_14 = arith.constant 0 : i32
    %13 = arith.index_cast %c0_i32_14 : i32 to index
    %c0_15 = arith.constant 0 : index
    %c0_16 = arith.constant 0 : index
    %14 = vector.load %arg9[%13, %c0_15, %c0_16] : memref<8x8x512xbf16, #tpu.memory_space<vmem>>, vector<1x8x512xbf16>
    %15 = vector.shape_cast %14 : vector<1x8x512xbf16> to vector<8x512xbf16>
    %16 = arith.extf %15 : vector<8x512xbf16> to vector<8x512xf32>
    %17 = arith.truncf %11 : vector<8x128xf32> to vector<8x128xbf16>
    %c0_17 = arith.constant 0 : index
    %c0_18 = arith.constant 0 : index
    %18 = vector.load %arg4[%c0_17, %c0_18] : memref<128x512xbf16, #tpu.memory_space<vmem>>, vector<128x512xbf16>
    %cst_19 = arith.constant dense<0.000000e+00> : vector<8x512xf32>
    %19 = tpu.matmul %17, %18, %cst_19 {dimension_numbers = #tpu.dot_dimension_numbers<[1], [0], [0], [1], [0, 0, 1, 1], [], []>} : vector<8x128xbf16>, vector<128x512xbf16>, vector<8x512xf32> -> vector<8x512xf32>
    %20 = arith.addf %16, %19 : vector<8x512xf32>
    %21 = vector.broadcast %10 : vector<1x512xf32> to vector<8x512xf32>
    %22 = arith.addf %20, %21 : vector<8x512xf32>
    %23 = vector.extract_strided_slice %22 {offsets = [0, 0], sizes = [8, 128], strides = [1, 1]} : vector<8x512xf32> to vector<8x128xf32>
    %cst_20 = arith.constant 5.000000e-01 : f32
    %24 = vector.broadcast %cst_20 : f32 to vector<8x128xf32>
    %25 = arith.mulf %24, %23 : vector<8x128xf32>
    %26 = math.tanh %25 : vector<8x128xf32>
    %cst_21 = arith.constant 5.000000e-01 : f32
    %27 = vector.broadcast %cst_21 : f32 to vector<8x128xf32>
    %28 = arith.mulf %27, %26 : vector<8x128xf32>
    %cst_22 = arith.constant 5.000000e-01 : f32
    %29 = vector.broadcast %cst_22 : f32 to vector<8x128xf32>
    %30 = arith.addf %28, %29 : vector<8x128xf32>
    %31 = vector.extract_strided_slice %22 {offsets = [0, 128], sizes = [8, 128], strides = [1, 1]} : vector<8x512xf32> to vector<8x128xf32>
    %cst_23 = arith.constant 5.000000e-01 : f32
    %32 = vector.broadcast %cst_23 : f32 to vector<8x128xf32>
    %33 = arith.mulf %32, %31 : vector<8x128xf32>
    %34 = math.tanh %33 : vector<8x128xf32>
    %cst_24 = arith.constant 5.000000e-01 : f32
    %35 = vector.broadcast %cst_24 : f32 to vector<8x128xf32>
    %36 = arith.mulf %35, %34 : vector<8x128xf32>
    %cst_25 = arith.constant 5.000000e-01 : f32
    %37 = vector.broadcast %cst_25 : f32 to vector<8x128xf32>
    %38 = arith.addf %36, %37 : vector<8x128xf32>
    %39 = vector.extract_strided_slice %22 {offsets = [0, 256], sizes = [8, 128], strides = [1, 1]} : vector<8x512xf32> to vector<8x128xf32>
    %40 = math.tanh %39 : vector<8x128xf32>
    %41 = vector.extract_strided_slice %22 {offsets = [0, 384], sizes = [8, 128], strides = [1, 1]} : vector<8x512xf32> to vector<8x128xf32>
    %cst_26 = arith.constant 5.000000e-01 : f32
    %42 = vector.broadcast %cst_26 : f32 to vector<8x128xf32>
    %43 = arith.mulf %42, %41 : vector<8x128xf32>
    %44 = math.tanh %43 : vector<8x128xf32>
    %cst_27 = arith.constant 5.000000e-01 : f32
    %45 = vector.broadcast %cst_27 : f32 to vector<8x128xf32>
    %46 = arith.mulf %45, %44 : vector<8x128xf32>
    %cst_28 = arith.constant 5.000000e-01 : f32
    %47 = vector.broadcast %cst_28 : f32 to vector<8x128xf32>
    %48 = arith.addf %46, %47 : vector<8x128xf32>
    %49 = arith.mulf %38, %12 : vector<8x128xf32>
    %50 = arith.mulf %30, %40 : vector<8x128xf32>
    %51 = arith.addf %49, %50 : vector<8x128xf32>
    %52 = math.tanh %51 : vector<8x128xf32>
    %53 = arith.mulf %48, %52 : vector<8x128xf32>
    %c1_i32 = arith.constant 1 : i32
    %54 = arith.index_cast %c1_i32 : i32 to index
    %c0_29 = arith.constant 0 : index
    %c0_30 = arith.constant 0 : index
    %55 = vector.load %arg9[%54, %c0_29, %c0_30] : memref<8x8x512xbf16, #tpu.memory_space<vmem>>, vector<1x8x512xbf16>
    %56 = vector.shape_cast %55 : vector<1x8x512xbf16> to vector<8x512xbf16>
    %57 = arith.extf %56 : vector<8x512xbf16> to vector<8x512xf32>
    %58 = arith.truncf %53 : vector<8x128xf32> to vector<8x128xbf16>
    %c0_31 = arith.constant 0 : index
    %c0_32 = arith.constant 0 : index
    %59 = vector.load %arg4[%c0_31, %c0_32] : memref<128x512xbf16, #tpu.memory_space<vmem>>, vector<128x512xbf16>
    %cst_33 = arith.constant dense<0.000000e+00> : vector<8x512xf32>
    %60 = tpu.matmul %58, %59, %cst_33 {dimension_numbers = #tpu.dot_dimension_numbers<[1], [0], [0], [1], [0, 0, 1, 1], [], []>} : vector<8x128xbf16>, vector<128x512xbf16>, vector<8x512xf32> -> vector<8x512xf32>
    %61 = arith.addf %57, %60 : vector<8x512xf32>
    %62 = vector.broadcast %10 : vector<1x512xf32> to vector<8x512xf32>
    %63 = arith.addf %61, %62 : vector<8x512xf32>
    %64 = vector.extract_strided_slice %63 {offsets = [0, 0], sizes = [8, 128], strides = [1, 1]} : vector<8x512xf32> to vector<8x128xf32>
    %cst_34 = arith.constant 5.000000e-01 : f32
    %65 = vector.broadcast %cst_34 : f32 to vector<8x128xf32>
    %66 = arith.mulf %65, %64 : vector<8x128xf32>
    %67 = math.tanh %66 : vector<8x128xf32>
    %cst_35 = arith.constant 5.000000e-01 : f32
    %68 = vector.broadcast %cst_35 : f32 to vector<8x128xf32>
    %69 = arith.mulf %68, %67 : vector<8x128xf32>
    %cst_36 = arith.constant 5.000000e-01 : f32
    %70 = vector.broadcast %cst_36 : f32 to vector<8x128xf32>
    %71 = arith.addf %69, %70 : vector<8x128xf32>
    %72 = vector.extract_strided_slice %63 {offsets = [0, 128], sizes = [8, 128], strides = [1, 1]} : vector<8x512xf32> to vector<8x128xf32>
    %cst_37 = arith.constant 5.000000e-01 : f32
    %73 = vector.broadcast %cst_37 : f32 to vector<8x128xf32>
    %74 = arith.mulf %73, %72 : vector<8x128xf32>
    %75 = math.tanh %74 : vector<8x128xf32>
    %cst_38 = arith.constant 5.000000e-01 : f32
    %76 = vector.broadcast %cst_38 : f32 to vector<8x128xf32>
    %77 = arith.mulf %76, %75 : vector<8x128xf32>
    %cst_39 = arith.constant 5.000000e-01 : f32
    %78 = vector.broadcast %cst_39 : f32 to vector<8x128xf32>
    %79 = arith.addf %77, %78 : vector<8x128xf32>
    %80 = vector.extract_strided_slice %63 {offsets = [0, 256], sizes = [8, 128], strides = [1, 1]} : vector<8x512xf32> to vector<8x128xf32>
    %81 = math.tanh %80 : vector<8x128xf32>
    %82 = vector.extract_strided_slice %63 {offsets = [0, 384], sizes = [8, 128], strides = [1, 1]} : vector<8x512xf32> to vector<8x128xf32>
    %cst_40 = arith.constant 5.000000e-01 : f32
    %83 = vector.broadcast %cst_40 : f32 to vector<8x128xf32>
    %84 = arith.mulf %83, %82 : vector<8x128xf32>
    %85 = math.tanh %84 : vector<8x128xf32>
    %cst_41 = arith.constant 5.000000e-01 : f32
    %86 = vector.broadcast %cst_41 : f32 to vector<8x128xf32>
    %87 = arith.mulf %86, %85 : vector<8x128xf32>
    %cst_42 = arith.constant 5.000000e-01 : f32
    %88 = vector.broadcast %cst_42 : f32 to vector<8x128xf32>
    %89 = arith.addf %87, %88 : vector<8x128xf32>
    %90 = arith.mulf %79, %51 : vector<8x128xf32>
    %91 = arith.mulf %71, %81 : vector<8x128xf32>
    %92 = arith.addf %90, %91 : vector<8x128xf32>
    %93 = math.tanh %92 : vector<8x128xf32>
    %94 = arith.mulf %89, %93 : vector<8x128xf32>
    %c2_i32 = arith.constant 2 : i32
    %95 = arith.index_cast %c2_i32 : i32 to index
    %c0_43 = arith.constant 0 : index
    %c0_44 = arith.constant 0 : index
    %96 = vector.load %arg9[%95, %c0_43, %c0_44] : memref<8x8x512xbf16, #tpu.memory_space<vmem>>, vector<1x8x512xbf16>
    %97 = vector.shape_cast %96 : vector<1x8x512xbf16> to vector<8x512xbf16>
    %98 = arith.extf %97 : vector<8x512xbf16> to vector<8x512xf32>
    %99 = arith.truncf %94 : vector<8x128xf32> to vector<8x128xbf16>
    %c0_45 = arith.constant 0 : index
    %c0_46 = arith.constant 0 : index
    %100 = vector.load %arg4[%c0_45, %c0_46] : memref<128x512xbf16, #tpu.memory_space<vmem>>, vector<128x512xbf16>
    %cst_47 = arith.constant dense<0.000000e+00> : vector<8x512xf32>
    %101 = tpu.matmul %99, %100, %cst_47 {dimension_numbers = #tpu.dot_dimension_numbers<[1], [0], [0], [1], [0, 0, 1, 1], [], []>} : vector<8x128xbf16>, vector<128x512xbf16>, vector<8x512xf32> -> vector<8x512xf32>
    %102 = arith.addf %98, %101 : vector<8x512xf32>
    %103 = vector.broadcast %10 : vector<1x512xf32> to vector<8x512xf32>
    %104 = arith.addf %102, %103 : vector<8x512xf32>
    %105 = vector.extract_strided_slice %104 {offsets = [0, 0], sizes = [8, 128], strides = [1, 1]} : vector<8x512xf32> to vector<8x128xf32>
    %cst_48 = arith.constant 5.000000e-01 : f32
    %106 = vector.broadcast %cst_48 : f32 to vector<8x128xf32>
    %107 = arith.mulf %106, %105 : vector<8x128xf32>
    %108 = math.tanh %107 : vector<8x128xf32>
    %cst_49 = arith.constant 5.000000e-01 : f32
    %109 = vector.broadcast %cst_49 : f32 to vector<8x128xf32>
    %110 = arith.mulf %109, %108 : vector<8x128xf32>
    %cst_50 = arith.constant 5.000000e-01 : f32
    %111 = vector.broadcast %cst_50 : f32 to vector<8x128xf32>
    %112 = arith.addf %110, %111 : vector<8x128xf32>
    %113 = vector.extract_strided_slice %104 {offsets = [0, 128], sizes = [8, 128], strides = [1, 1]} : vector<8x512xf32> to vector<8x128xf32>
    %cst_51 = arith.constant 5.000000e-01 : f32
    %114 = vector.broadcast %cst_51 : f32 to vector<8x128xf32>
    %115 = arith.mulf %114, %113 : vector<8x128xf32>
    %116 = math.tanh %115 : vector<8x128xf32>
    %cst_52 = arith.constant 5.000000e-01 : f32
    %117 = vector.broadcast %cst_52 : f32 to vector<8x128xf32>
    %118 = arith.mulf %117, %116 : vector<8x128xf32>
    %cst_53 = arith.constant 5.000000e-01 : f32
    %119 = vector.broadcast %cst_53 : f32 to vector<8x128xf32>
    %120 = arith.addf %118, %119 : vector<8x128xf32>
    %121 = vector.extract_strided_slice %104 {offsets = [0, 256], sizes = [8, 128], strides = [1, 1]} : vector<8x512xf32> to vector<8x128xf32>
    %122 = math.tanh %121 : vector<8x128xf32>
    %123 = vector.extract_strided_slice %104 {offsets = [0, 384], sizes = [8, 128], strides = [1, 1]} : vector<8x512xf32> to vector<8x128xf32>
    %cst_54 = arith.constant 5.000000e-01 : f32
    %124 = vector.broadcast %cst_54 : f32 to vector<8x128xf32>
    %125 = arith.mulf %124, %123 : vector<8x128xf32>
    %126 = math.tanh %125 : vector<8x128xf32>
    %cst_55 = arith.constant 5.000000e-01 : f32
    %127 = vector.broadcast %cst_55 : f32 to vector<8x128xf32>
    %128 = arith.mulf %127, %126 : vector<8x128xf32>
    %cst_56 = arith.constant 5.000000e-01 : f32
    %129 = vector.broadcast %cst_56 : f32 to vector<8x128xf32>
    %130 = arith.addf %128, %129 : vector<8x128xf32>
    %131 = arith.mulf %120, %92 : vector<8x128xf32>
    %132 = arith.mulf %112, %122 : vector<8x128xf32>
    %133 = arith.addf %131, %132 : vector<8x128xf32>
    %134 = math.tanh %133 : vector<8x128xf32>
    %135 = arith.mulf %130, %134 : vector<8x128xf32>
    %c3_i32 = arith.constant 3 : i32
    %136 = arith.index_cast %c3_i32 : i32 to index
    %c0_57 = arith.constant 0 : index
    %c0_58 = arith.constant 0 : index
    %137 = vector.load %arg9[%136, %c0_57, %c0_58] : memref<8x8x512xbf16, #tpu.memory_space<vmem>>, vector<1x8x512xbf16>
    %138 = vector.shape_cast %137 : vector<1x8x512xbf16> to vector<8x512xbf16>
    %139 = arith.extf %138 : vector<8x512xbf16> to vector<8x512xf32>
    %140 = arith.truncf %135 : vector<8x128xf32> to vector<8x128xbf16>
    %c0_59 = arith.constant 0 : index
    %c0_60 = arith.constant 0 : index
    %141 = vector.load %arg4[%c0_59, %c0_60] : memref<128x512xbf16, #tpu.memory_space<vmem>>, vector<128x512xbf16>
    %cst_61 = arith.constant dense<0.000000e+00> : vector<8x512xf32>
    %142 = tpu.matmul %140, %141, %cst_61 {dimension_numbers = #tpu.dot_dimension_numbers<[1], [0], [0], [1], [0, 0, 1, 1], [], []>} : vector<8x128xbf16>, vector<128x512xbf16>, vector<8x512xf32> -> vector<8x512xf32>
    %143 = arith.addf %139, %142 : vector<8x512xf32>
    %144 = vector.broadcast %10 : vector<1x512xf32> to vector<8x512xf32>
    %145 = arith.addf %143, %144 : vector<8x512xf32>
    %146 = vector.extract_strided_slice %145 {offsets = [0, 0], sizes = [8, 128], strides = [1, 1]} : vector<8x512xf32> to vector<8x128xf32>
    %cst_62 = arith.constant 5.000000e-01 : f32
    %147 = vector.broadcast %cst_62 : f32 to vector<8x128xf32>
    %148 = arith.mulf %147, %146 : vector<8x128xf32>
    %149 = math.tanh %148 : vector<8x128xf32>
    %cst_63 = arith.constant 5.000000e-01 : f32
    %150 = vector.broadcast %cst_63 : f32 to vector<8x128xf32>
    %151 = arith.mulf %150, %149 : vector<8x128xf32>
    %cst_64 = arith.constant 5.000000e-01 : f32
    %152 = vector.broadcast %cst_64 : f32 to vector<8x128xf32>
    %153 = arith.addf %151, %152 : vector<8x128xf32>
    %154 = vector.extract_strided_slice %145 {offsets = [0, 128], sizes = [8, 128], strides = [1, 1]} : vector<8x512xf32> to vector<8x128xf32>
    %cst_65 = arith.constant 5.000000e-01 : f32
    %155 = vector.broadcast %cst_65 : f32 to vector<8x128xf32>
    %156 = arith.mulf %155, %154 : vector<8x128xf32>
    %157 = math.tanh %156 : vector<8x128xf32>
    %cst_66 = arith.constant 5.000000e-01 : f32
    %158 = vector.broadcast %cst_66 : f32 to vector<8x128xf32>
    %159 = arith.mulf %158, %157 : vector<8x128xf32>
    %cst_67 = arith.constant 5.000000e-01 : f32
    %160 = vector.broadcast %cst_67 : f32 to vector<8x128xf32>
    %161 = arith.addf %159, %160 : vector<8x128xf32>
    %162 = vector.extract_strided_slice %145 {offsets = [0, 256], sizes = [8, 128], strides = [1, 1]} : vector<8x512xf32> to vector<8x128xf32>
    %163 = math.tanh %162 : vector<8x128xf32>
    %164 = vector.extract_strided_slice %145 {offsets = [0, 384], sizes = [8, 128], strides = [1, 1]} : vector<8x512xf32> to vector<8x128xf32>
    %cst_68 = arith.constant 5.000000e-01 : f32
    %165 = vector.broadcast %cst_68 : f32 to vector<8x128xf32>
    %166 = arith.mulf %165, %164 : vector<8x128xf32>
    %167 = math.tanh %166 : vector<8x128xf32>
    %cst_69 = arith.constant 5.000000e-01 : f32
    %168 = vector.broadcast %cst_69 : f32 to vector<8x128xf32>
    %169 = arith.mulf %168, %167 : vector<8x128xf32>
    %cst_70 = arith.constant 5.000000e-01 : f32
    %170 = vector.broadcast %cst_70 : f32 to vector<8x128xf32>
    %171 = arith.addf %169, %170 : vector<8x128xf32>
    %172 = arith.mulf %161, %133 : vector<8x128xf32>
    %173 = arith.mulf %153, %163 : vector<8x128xf32>
    %174 = arith.addf %172, %173 : vector<8x128xf32>
    %175 = math.tanh %174 : vector<8x128xf32>
    %176 = arith.mulf %171, %175 : vector<8x128xf32>
    %c4_i32 = arith.constant 4 : i32
    %177 = arith.index_cast %c4_i32 : i32 to index
    %c0_71 = arith.constant 0 : index
    %c0_72 = arith.constant 0 : index
    %178 = vector.load %arg9[%177, %c0_71, %c0_72] : memref<8x8x512xbf16, #tpu.memory_space<vmem>>, vector<1x8x512xbf16>
    %179 = vector.shape_cast %178 : vector<1x8x512xbf16> to vector<8x512xbf16>
    %180 = arith.extf %179 : vector<8x512xbf16> to vector<8x512xf32>
    %181 = arith.truncf %176 : vector<8x128xf32> to vector<8x128xbf16>
    %c0_73 = arith.constant 0 : index
    %c0_74 = arith.constant 0 : index
    %182 = vector.load %arg4[%c0_73, %c0_74] : memref<128x512xbf16, #tpu.memory_space<vmem>>, vector<128x512xbf16>
    %cst_75 = arith.constant dense<0.000000e+00> : vector<8x512xf32>
    %183 = tpu.matmul %181, %182, %cst_75 {dimension_numbers = #tpu.dot_dimension_numbers<[1], [0], [0], [1], [0, 0, 1, 1], [], []>} : vector<8x128xbf16>, vector<128x512xbf16>, vector<8x512xf32> -> vector<8x512xf32>
    %184 = arith.addf %180, %183 : vector<8x512xf32>
    %185 = vector.broadcast %10 : vector<1x512xf32> to vector<8x512xf32>
    %186 = arith.addf %184, %185 : vector<8x512xf32>
    %187 = vector.extract_strided_slice %186 {offsets = [0, 0], sizes = [8, 128], strides = [1, 1]} : vector<8x512xf32> to vector<8x128xf32>
    %cst_76 = arith.constant 5.000000e-01 : f32
    %188 = vector.broadcast %cst_76 : f32 to vector<8x128xf32>
    %189 = arith.mulf %188, %187 : vector<8x128xf32>
    %190 = math.tanh %189 : vector<8x128xf32>
    %cst_77 = arith.constant 5.000000e-01 : f32
    %191 = vector.broadcast %cst_77 : f32 to vector<8x128xf32>
    %192 = arith.mulf %191, %190 : vector<8x128xf32>
    %cst_78 = arith.constant 5.000000e-01 : f32
    %193 = vector.broadcast %cst_78 : f32 to vector<8x128xf32>
    %194 = arith.addf %192, %193 : vector<8x128xf32>
    %195 = vector.extract_strided_slice %186 {offsets = [0, 128], sizes = [8, 128], strides = [1, 1]} : vector<8x512xf32> to vector<8x128xf32>
    %cst_79 = arith.constant 5.000000e-01 : f32
    %196 = vector.broadcast %cst_79 : f32 to vector<8x128xf32>
    %197 = arith.mulf %196, %195 : vector<8x128xf32>
    %198 = math.tanh %197 : vector<8x128xf32>
    %cst_80 = arith.constant 5.000000e-01 : f32
    %199 = vector.broadcast %cst_80 : f32 to vector<8x128xf32>
    %200 = arith.mulf %199, %198 : vector<8x128xf32>
    %cst_81 = arith.constant 5.000000e-01 : f32
    %201 = vector.broadcast %cst_81 : f32 to vector<8x128xf32>
    %202 = arith.addf %200, %201 : vector<8x128xf32>
    %203 = vector.extract_strided_slice %186 {offsets = [0, 256], sizes = [8, 128], strides = [1, 1]} : vector<8x512xf32> to vector<8x128xf32>
    %204 = math.tanh %203 : vector<8x128xf32>
    %205 = vector.extract_strided_slice %186 {offsets = [0, 384], sizes = [8, 128], strides = [1, 1]} : vector<8x512xf32> to vector<8x128xf32>
    %cst_82 = arith.constant 5.000000e-01 : f32
    %206 = vector.broadcast %cst_82 : f32 to vector<8x128xf32>
    %207 = arith.mulf %206, %205 : vector<8x128xf32>
    %208 = math.tanh %207 : vector<8x128xf32>
    %cst_83 = arith.constant 5.000000e-01 : f32
    %209 = vector.broadcast %cst_83 : f32 to vector<8x128xf32>
    %210 = arith.mulf %209, %208 : vector<8x128xf32>
    %cst_84 = arith.constant 5.000000e-01 : f32
    %211 = vector.broadcast %cst_84 : f32 to vector<8x128xf32>
    %212 = arith.addf %210, %211 : vector<8x128xf32>
    %213 = arith.mulf %202, %174 : vector<8x128xf32>
    %214 = arith.mulf %194, %204 : vector<8x128xf32>
    %215 = arith.addf %213, %214 : vector<8x128xf32>
    %216 = math.tanh %215 : vector<8x128xf32>
    %217 = arith.mulf %212, %216 : vector<8x128xf32>
    %c5_i32 = arith.constant 5 : i32
    %218 = arith.index_cast %c5_i32 : i32 to index
    %c0_85 = arith.constant 0 : index
    %c0_86 = arith.constant 0 : index
    %219 = vector.load %arg9[%218, %c0_85, %c0_86] : memref<8x8x512xbf16, #tpu.memory_space<vmem>>, vector<1x8x512xbf16>
    %220 = vector.shape_cast %219 : vector<1x8x512xbf16> to vector<8x512xbf16>
    %221 = arith.extf %220 : vector<8x512xbf16> to vector<8x512xf32>
    %222 = arith.truncf %217 : vector<8x128xf32> to vector<8x128xbf16>
    %c0_87 = arith.constant 0 : index
    %c0_88 = arith.constant 0 : index
    %223 = vector.load %arg4[%c0_87, %c0_88] : memref<128x512xbf16, #tpu.memory_space<vmem>>, vector<128x512xbf16>
    %cst_89 = arith.constant dense<0.000000e+00> : vector<8x512xf32>
    %224 = tpu.matmul %222, %223, %cst_89 {dimension_numbers = #tpu.dot_dimension_numbers<[1], [0], [0], [1], [0, 0, 1, 1], [], []>} : vector<8x128xbf16>, vector<128x512xbf16>, vector<8x512xf32> -> vector<8x512xf32>
    %225 = arith.addf %221, %224 : vector<8x512xf32>
    %226 = vector.broadcast %10 : vector<1x512xf32> to vector<8x512xf32>
    %227 = arith.addf %225, %226 : vector<8x512xf32>
    %228 = vector.extract_strided_slice %227 {offsets = [0, 0], sizes = [8, 128], strides = [1, 1]} : vector<8x512xf32> to vector<8x128xf32>
    %cst_90 = arith.constant 5.000000e-01 : f32
    %229 = vector.broadcast %cst_90 : f32 to vector<8x128xf32>
    %230 = arith.mulf %229, %228 : vector<8x128xf32>
    %231 = math.tanh %230 : vector<8x128xf32>
    %cst_91 = arith.constant 5.000000e-01 : f32
    %232 = vector.broadcast %cst_91 : f32 to vector<8x128xf32>
    %233 = arith.mulf %232, %231 : vector<8x128xf32>
    %cst_92 = arith.constant 5.000000e-01 : f32
    %234 = vector.broadcast %cst_92 : f32 to vector<8x128xf32>
    %235 = arith.addf %233, %234 : vector<8x128xf32>
    %236 = vector.extract_strided_slice %227 {offsets = [0, 128], sizes = [8, 128], strides = [1, 1]} : vector<8x512xf32> to vector<8x128xf32>
    %cst_93 = arith.constant 5.000000e-01 : f32
    %237 = vector.broadcast %cst_93 : f32 to vector<8x128xf32>
    %238 = arith.mulf %237, %236 : vector<8x128xf32>
    %239 = math.tanh %238 : vector<8x128xf32>
    %cst_94 = arith.constant 5.000000e-01 : f32
    %240 = vector.broadcast %cst_94 : f32 to vector<8x128xf32>
    %241 = arith.mulf %240, %239 : vector<8x128xf32>
    %cst_95 = arith.constant 5.000000e-01 : f32
    %242 = vector.broadcast %cst_95 : f32 to vector<8x128xf32>
    %243 = arith.addf %241, %242 : vector<8x128xf32>
    %244 = vector.extract_strided_slice %227 {offsets = [0, 256], sizes = [8, 128], strides = [1, 1]} : vector<8x512xf32> to vector<8x128xf32>
    %245 = math.tanh %244 : vector<8x128xf32>
    %246 = vector.extract_strided_slice %227 {offsets = [0, 384], sizes = [8, 128], strides = [1, 1]} : vector<8x512xf32> to vector<8x128xf32>
    %cst_96 = arith.constant 5.000000e-01 : f32
    %247 = vector.broadcast %cst_96 : f32 to vector<8x128xf32>
    %248 = arith.mulf %247, %246 : vector<8x128xf32>
    %249 = math.tanh %248 : vector<8x128xf32>
    %cst_97 = arith.constant 5.000000e-01 : f32
    %250 = vector.broadcast %cst_97 : f32 to vector<8x128xf32>
    %251 = arith.mulf %250, %249 : vector<8x128xf32>
    %cst_98 = arith.constant 5.000000e-01 : f32
    %252 = vector.broadcast %cst_98 : f32 to vector<8x128xf32>
    %253 = arith.addf %251, %252 : vector<8x128xf32>
    %254 = arith.mulf %243, %215 : vector<8x128xf32>
    %255 = arith.mulf %235, %245 : vector<8x128xf32>
    %256 = arith.addf %254, %255 : vector<8x128xf32>
    %257 = math.tanh %256 : vector<8x128xf32>
    %258 = arith.mulf %253, %257 : vector<8x128xf32>
    %c6_i32 = arith.constant 6 : i32
    %259 = arith.index_cast %c6_i32 : i32 to index
    %c0_99 = arith.constant 0 : index
    %c0_100 = arith.constant 0 : index
    %260 = vector.load %arg9[%259, %c0_99, %c0_100] : memref<8x8x512xbf16, #tpu.memory_space<vmem>>, vector<1x8x512xbf16>
    %261 = vector.shape_cast %260 : vector<1x8x512xbf16> to vector<8x512xbf16>
    %262 = arith.extf %261 : vector<8x512xbf16> to vector<8x512xf32>
    %263 = arith.truncf %258 : vector<8x128xf32> to vector<8x128xbf16>
    %c0_101 = arith.constant 0 : index
    %c0_102 = arith.constant 0 : index
    %264 = vector.load %arg4[%c0_101, %c0_102] : memref<128x512xbf16, #tpu.memory_space<vmem>>, vector<128x512xbf16>
    %cst_103 = arith.constant dense<0.000000e+00> : vector<8x512xf32>
    %265 = tpu.matmul %263, %264, %cst_103 {dimension_numbers = #tpu.dot_dimension_numbers<[1], [0], [0], [1], [0, 0, 1, 1], [], []>} : vector<8x128xbf16>, vector<128x512xbf16>, vector<8x512xf32> -> vector<8x512xf32>
    %266 = arith.addf %262, %265 : vector<8x512xf32>
    %267 = vector.broadcast %10 : vector<1x512xf32> to vector<8x512xf32>
    %268 = arith.addf %266, %267 : vector<8x512xf32>
    %269 = vector.extract_strided_slice %268 {offsets = [0, 0], sizes = [8, 128], strides = [1, 1]} : vector<8x512xf32> to vector<8x128xf32>
    %cst_104 = arith.constant 5.000000e-01 : f32
    %270 = vector.broadcast %cst_104 : f32 to vector<8x128xf32>
    %271 = arith.mulf %270, %269 : vector<8x128xf32>
    %272 = math.tanh %271 : vector<8x128xf32>
    %cst_105 = arith.constant 5.000000e-01 : f32
    %273 = vector.broadcast %cst_105 : f32 to vector<8x128xf32>
    %274 = arith.mulf %273, %272 : vector<8x128xf32>
    %cst_106 = arith.constant 5.000000e-01 : f32
    %275 = vector.broadcast %cst_106 : f32 to vector<8x128xf32>
    %276 = arith.addf %274, %275 : vector<8x128xf32>
    %277 = vector.extract_strided_slice %268 {offsets = [0, 128], sizes = [8, 128], strides = [1, 1]} : vector<8x512xf32> to vector<8x128xf32>
    %cst_107 = arith.constant 5.000000e-01 : f32
    %278 = vector.broadcast %cst_107 : f32 to vector<8x128xf32>
    %279 = arith.mulf %278, %277 : vector<8x128xf32>
    %280 = math.tanh %279 : vector<8x128xf32>
    %cst_108 = arith.constant 5.000000e-01 : f32
    %281 = vector.broadcast %cst_108 : f32 to vector<8x128xf32>
    %282 = arith.mulf %281, %280 : vector<8x128xf32>
    %cst_109 = arith.constant 5.000000e-01 : f32
    %283 = vector.broadcast %cst_109 : f32 to vector<8x128xf32>
    %284 = arith.addf %282, %283 : vector<8x128xf32>
    %285 = vector.extract_strided_slice %268 {offsets = [0, 256], sizes = [8, 128], strides = [1, 1]} : vector<8x512xf32> to vector<8x128xf32>
    %286 = math.tanh %285 : vector<8x128xf32>
    %287 = vector.extract_strided_slice %268 {offsets = [0, 384], sizes = [8, 128], strides = [1, 1]} : vector<8x512xf32> to vector<8x128xf32>
    %cst_110 = arith.constant 5.000000e-01 : f32
    %288 = vector.broadcast %cst_110 : f32 to vector<8x128xf32>
    %289 = arith.mulf %288, %287 : vector<8x128xf32>
    %290 = math.tanh %289 : vector<8x128xf32>
    %cst_111 = arith.constant 5.000000e-01 : f32
    %291 = vector.broadcast %cst_111 : f32 to vector<8x128xf32>
    %292 = arith.mulf %291, %290 : vector<8x128xf32>
    %cst_112 = arith.constant 5.000000e-01 : f32
    %293 = vector.broadcast %cst_112 : f32 to vector<8x128xf32>
    %294 = arith.addf %292, %293 : vector<8x128xf32>
    %295 = arith.mulf %284, %256 : vector<8x128xf32>
    %296 = arith.mulf %276, %286 : vector<8x128xf32>
    %297 = arith.addf %295, %296 : vector<8x128xf32>
    %298 = math.tanh %297 : vector<8x128xf32>
    %299 = arith.mulf %294, %298 : vector<8x128xf32>
    %c7_i32 = arith.constant 7 : i32
    %300 = arith.index_cast %c7_i32 : i32 to index
    %c0_113 = arith.constant 0 : index
    %c0_114 = arith.constant 0 : index
    %301 = vector.load %arg9[%300, %c0_113, %c0_114] : memref<8x8x512xbf16, #tpu.memory_space<vmem>>, vector<1x8x512xbf16>
    %302 = vector.shape_cast %301 : vector<1x8x512xbf16> to vector<8x512xbf16>
    %303 = arith.extf %302 : vector<8x512xbf16> to vector<8x512xf32>
    %304 = arith.truncf %299 : vector<8x128xf32> to vector<8x128xbf16>
    %c0_115 = arith.constant 0 : index
    %c0_116 = arith.constant 0 : index
    %305 = vector.load %arg4[%c0_115, %c0_116] : memref<128x512xbf16, #tpu.memory_space<vmem>>, vector<128x512xbf16>
    %cst_117 = arith.constant dense<0.000000e+00> : vector<8x512xf32>
    %306 = tpu.matmul %304, %305, %cst_117 {dimension_numbers = #tpu.dot_dimension_numbers<[1], [0], [0], [1], [0, 0, 1, 1], [], []>} : vector<8x128xbf16>, vector<128x512xbf16>, vector<8x512xf32> -> vector<8x512xf32>
    %307 = arith.addf %303, %306 : vector<8x512xf32>
    %308 = vector.broadcast %10 : vector<1x512xf32> to vector<8x512xf32>
    %309 = arith.addf %307, %308 : vector<8x512xf32>
    %310 = vector.extract_strided_slice %309 {offsets = [0, 0], sizes = [8, 128], strides = [1, 1]} : vector<8x512xf32> to vector<8x128xf32>
    %cst_118 = arith.constant 5.000000e-01 : f32
    %311 = vector.broadcast %cst_118 : f32 to vector<8x128xf32>
    %312 = arith.mulf %311, %310 : vector<8x128xf32>
    %313 = math.tanh %312 : vector<8x128xf32>
    %cst_119 = arith.constant 5.000000e-01 : f32
    %314 = vector.broadcast %cst_119 : f32 to vector<8x128xf32>
    %315 = arith.mulf %314, %313 : vector<8x128xf32>
    %cst_120 = arith.constant 5.000000e-01 : f32
    %316 = vector.broadcast %cst_120 : f32 to vector<8x128xf32>
    %317 = arith.addf %315, %316 : vector<8x128xf32>
    %318 = vector.extract_strided_slice %309 {offsets = [0, 128], sizes = [8, 128], strides = [1, 1]} : vector<8x512xf32> to vector<8x128xf32>
    %cst_121 = arith.constant 5.000000e-01 : f32
    %319 = vector.broadcast %cst_121 : f32 to vector<8x128xf32>
    %320 = arith.mulf %319, %318 : vector<8x128xf32>
    %321 = math.tanh %320 : vector<8x128xf32>
    %cst_122 = arith.constant 5.000000e-01 : f32
    %322 = vector.broadcast %cst_122 : f32 to vector<8x128xf32>
    %323 = arith.mulf %322, %321 : vector<8x128xf32>
    %cst_123 = arith.constant 5.000000e-01 : f32
    %324 = vector.broadcast %cst_123 : f32 to vector<8x128xf32>
    %325 = arith.addf %323, %324 : vector<8x128xf32>
    %326 = vector.extract_strided_slice %309 {offsets = [0, 256], sizes = [8, 128], strides = [1, 1]} : vector<8x512xf32> to vector<8x128xf32>
    %327 = math.tanh %326 : vector<8x128xf32>
    %328 = vector.extract_strided_slice %309 {offsets = [0, 384], sizes = [8, 128], strides = [1, 1]} : vector<8x512xf32> to vector<8x128xf32>
    %cst_124 = arith.constant 5.000000e-01 : f32
    %329 = vector.broadcast %cst_124 : f32 to vector<8x128xf32>
    %330 = arith.mulf %329, %328 : vector<8x128xf32>
    %331 = math.tanh %330 : vector<8x128xf32>
    %cst_125 = arith.constant 5.000000e-01 : f32
    %332 = vector.broadcast %cst_125 : f32 to vector<8x128xf32>
    %333 = arith.mulf %332, %331 : vector<8x128xf32>
    %cst_126 = arith.constant 5.000000e-01 : f32
    %334 = vector.broadcast %cst_126 : f32 to vector<8x128xf32>
    %335 = arith.addf %333, %334 : vector<8x128xf32>
    %336 = arith.mulf %325, %297 : vector<8x128xf32>
    %337 = arith.mulf %317, %327 : vector<8x128xf32>
    %338 = arith.addf %336, %337 : vector<8x128xf32>
    %339 = math.tanh %338 : vector<8x128xf32>
    %340 = arith.mulf %335, %339 : vector<8x128xf32>
    %c8_i32 = arith.constant 8 : i32
    %c0_127 = arith.constant 0 : index
    %c0_128 = arith.constant 0 : index
    %341 = vector.load %arg10[%c0_127, %c0_128] : memref<8x128xf32, #tpu.memory_space<vmem>>, vector<8x128xf32>
    tpu.vector_store %arg10[%c0_127, %c0_128], %340 {strides = array<i32>} : memref<8x128xf32, #tpu.memory_space<vmem>>, vector<8x128xf32>,
    %c0_129 = arith.constant 0 : index
    %c0_130 = arith.constant 0 : index
    %342 = vector.load %arg11[%c0_129, %c0_130] : memref<8x128xf32, #tpu.memory_space<vmem>>, vector<8x128xf32>
    tpu.vector_store %arg11[%c0_129, %c0_130], %338 {strides = array<i32>} : memref<8x128xf32, #tpu.memory_space<vmem>>, vector<8x128xf32>,
    %c0_i32_131 = arith.constant 0 : i32
    %343 = arith.cmpi eq, %arg1, %c0_i32_131 : i32
    %344 = arith.extui %343 : i1 to i32
    %c0_i32_132 = arith.constant 0 : i32
    %345 = arith.cmpi ne, %344, %c0_i32_132 : i32
    scf.if %345 {
      %346 = arith.truncf %340 : vector<8x128xf32> to vector<8x128xbf16>
      %c0_133 = arith.constant 0 : index
      %c0_134 = arith.constant 0 : index
      %347 = vector.load %arg6[%c0_133, %c0_134] : memref<128x128xbf16, #tpu.memory_space<vmem>>, vector<128x128xbf16>
      %cst_135 = arith.constant dense<0.000000e+00> : vector<8x128xf32>
      %348 = tpu.matmul %346, %347, %cst_135 {dimension_numbers = #tpu.dot_dimension_numbers<[1], [0], [0], [1], [0, 0, 1, 1], [], []>} : vector<8x128xbf16>, vector<128x128xbf16>, vector<8x128xf32> -> vector<8x128xf32>
      %c0_136 = arith.constant 0 : index
      %c0_137 = arith.constant 0 : index
      %349 = vector.load %arg7[%c0_136, %c0_137] : memref<1x128xf32, #tpu.memory_space<vmem>>, vector<1x128xf32>
      %350 = vector.broadcast %349 : vector<1x128xf32> to vector<8x128xf32>
      %351 = arith.addf %348, %350 : vector<8x128xf32>
      %c0_138 = arith.constant 0 : index
      %c0_139 = arith.constant 0 : index
      %352 = vector.load %arg8[%c0_138, %c0_139] : memref<8x128xf32, #tpu.memory_space<vmem>>, vector<8x128xf32>
      tpu.vector_store %arg8[%c0_138, %c0_139], %351 {strides = array<i32>} : memref<8x128xf32, #tpu.memory_space<vmem>>, vector<8x128xf32>,
    } else {
    }
    return
  }
  func.func @transform_0(%arg0: i32, %arg1: i32) -> (i32, i32, i32) {
    %c0_i32 = arith.constant 0 : i32
    %c0_i32_0 = arith.constant 0 : i32
    return %arg1, %arg0, %c0_i32 : i32, i32, i32
  }
  func.func @transform_1(%arg0: i32, %arg1: i32) -> (i32, i32) {
    %c0_i32 = arith.constant 0 : i32
    %c0_i32_0 = arith.constant 0 : i32
    %c0_i32_1 = arith.constant 0 : i32
    return %c0_i32, %c0_i32_0 : i32, i32
  }
  func.func @transform_2(%arg0: i32, %arg1: i32) -> (i32, i32) {
    %c0_i32 = arith.constant 0 : i32
    %c0_i32_0 = arith.constant 0 : i32
    %c0_i32_1 = arith.constant 0 : i32
    return %c0_i32, %c0_i32_0 : i32, i32
  }
  func.func @transform_3(%arg0: i32, %arg1: i32) -> (i32, i32) {
    %c0_i32 = arith.constant 0 : i32
    %c0_i32_0 = arith.constant 0 : i32
    %c0_i32_1 = arith.constant 0 : i32
    return %c0_i32, %c0_i32_0 : i32, i32
  }
  func.func @transform_4(%arg0: i32, %arg1: i32) -> (i32, i32) {
    %c0_i32 = arith.constant 0 : i32
    %c0_i32_0 = arith.constant 0 : i32
    %c0_i32_1 = arith.constant 0 : i32
    return %c0_i32, %c0_i32_0 : i32, i32
  }
  func.func @transform_5(%arg0: i32, %arg1: i32) -> (i32, i32) {
    %c0_i32 = arith.constant 0 : i32
    %c0_i32_0 = arith.constant 0 : i32
    %c0_i32_1 = arith.constant 0 : i32
    return %c0_i32, %c0_i32_0 : i32, i32
  }
  func.func @transform_6(%arg0: i32, %arg1: i32) -> (i32, i32) {
    %c0_i32 = arith.constant 0 : i32
    %c0_i32_0 = arith.constant 0 : i32
    return %arg0, %c0_i32 : i32, i32
  }
}

</mosaic_0001>

<bundles_post_ra>
// kernel: lstm_classifier_forward.1
= control target key start
LH: loop header
LB: loop body
LE: loop exit
PB: predicated region body
PF: predicated region fallthrough
CT: control target
= control target key end

     0   :  { %v2775_v1 = vmov 0   ;;  %vm82_vm0 = vcmask 130048   ;;  %v1951_v41 = vmov 0.0|0.0   ;;  %vm1953_vm1 = vmmov 0   ;;  %s2768_s1 = inlined_call_operand.vmem [shape: bf16[16,512], index: 1, kind: input, shape index: {}]   ;;  %s2769_s0 = inlined_call_operand.vmem [shape: bf16[8,8,16], index: 0, kind: input, shape index: {}]   ;;  %s2770_s2 = inlined_call_operand.vmem [shape: bf16[128,512], index: 2, kind: input, shape index: {}]   ;;  %s2771_s3 = inlined_call_operand.vmem [shape: f32[1,512], index: 3, kind: input, shape index: {}]   ;;  %s2772_s4 = inlined_call_operand.vmem [shape: bf16[128,128], index: 4, kind: input, shape index: {}]   ;;  %s2773_s5 = inlined_call_operand.vmem [shape: f32[1,128], index: 5, kind: input, shape index: {}]   ;;  %s2774_s6 = inlined_call_operand.vmem [shape: f32[8,128], index: 6, kind: output, shape index: {}]  }
   0x1   :  { %v1772_v0 = vld [vmem:[%s2768_s1 + $0x4] ss:$16 sps:$4 sm:$0xff]   ;;  %127 = vmatprep.mubr.bf16.mxu0 %v2775_v1  ;;  %200 = vmatprep.mubr.bf16.mxu1 %v2775_v1  ;;  %v1774_v2 = vld [vmem:[%s2768_s1 + $0xc] ss:$16 sps:$4 sm:$0xff]   ;;  %v1776_v3 = vld [vmem:[%s2768_s1] ss:$16 sps:$4 sm:$0xff]  }
   0x2   :  { %95 = vmatprep.subr.bf16.mxu0 %v1772_v0  ;;  %v1777_v4 = vld [vmem:[%s2768_s1 + $0x8] ss:$16 sps:$4 sm:$0xff]   ;;  %168 = vmatprep.subr.bf16.mxu1 %v1774_v2  ;;  %v1778_v5 = vld [vmem:[%s2769_s0] sm:$0xff]   ;;  %v2014_v7 = vld [vmem:[%s2770_s2 + $0xc] ss:$16 sps:$4 sm:$0xff]  }
   0x3   :  { %96 = vmatpush1.bf16.msra.mxu0 %v1776_v3  ;;  %169 = vmatpush1.bf16.msra.mxu1 %v1777_v4  ;;  %v2009_v6 = vld [vmem:[%s2770_s2 + $0x4] ss:$16 sps:$4 sm:$0xff]   ;;  %v2019_v8 = vld [vmem:[%s2770_s2] ss:$16 sps:$4 sm:$0xff]   ;;  %v2025_v9 = vld [vmem:[%s2770_s2 + $0x8] ss:$16 sps:$4 sm:$0xff]  }
   0x4   :  { %587 = vmatprep.subr.bf16.mxu0 %v2009_v6  ;;  %v2032_v10 = vld [vmem:[%s2770_s2 + $0x24] ss:$16 sps:$4 sm:$0xff]   ;;  %628 = vmatprep.subr.bf16.mxu1 %v2014_v7  ;;  %v2039_v11 = vld [vmem:[%s2770_s2 + $0x2c] ss:$16 sps:$4 sm:$0xff]   ;;  %v2044_v12 = vld [vmem:[%s2770_s2 + $0x20] ss:$16 sps:$4 sm:$0xff]  }
   0x5   :  { %v2049_v13 = vld [vmem:[%s2770_s2 + $0x28] ss:$16 sps:$4 sm:$0xff]   ;;  %v2061_v15 = vld [vmem:[%s2770_s2 + $0x44] ss:$16 sps:$4 sm:$0xff]   ;;  %v2067_v16 = vld [vmem:[%s2770_s2 + $0x4c] ss:$16 sps:$4 sm:$0xff]  }
   0x6   :  { %1658 = vmatmul.mubr.msk.bf16.vlgmr.msra.gmra.mrb[0].mxu0 %vm82_vm0, %v1778_v5  ;;  %1662 = vmatmul.mubr.msk.bf16.vlgmr.msra.gmra.mrb[0].mxu1 %vm82_vm0, %v1778_v5  ;;  %v1791_v14 = vld [vmem:[%s2769_s0 + $0x8] sm:$0xff]   ;;  %v2073_v17 = vld [vmem:[%s2770_s2 + $0x40] ss:$16 sps:$4 sm:$0xff]   ;;  %v2085_v19 = vld [vmem:[%s2770_s2 + $0x64] ss:$16 sps:$4 sm:$0xff]  }
   0x7   :  { %588 = vmatpush1.bf16.msra.mxu0 %v2019_v8  ;;  %629 = vmatpush1.bf16.msra.mxu1 %v2025_v9  ;;  %v2078_v18 = vld [vmem:[%s2770_s2 + $0x48] ss:$16 sps:$4 sm:$0xff]   ;;  %v2091_v20 = vld [vmem:[%s2770_s2 + $0x6c] ss:$16 sps:$4 sm:$0xff]   ;;  %v2098_v21 = vld [vmem:[%s2770_s2 + $0x60] ss:$16 sps:$4 sm:$0xff]  }
   0x8   :  { %589 = vmatprep.subr.bf16.mxu0 %v2032_v10  ;;  %630 = vmatprep.subr.bf16.mxu1 %v2039_v11  ;;  %v2104_v22 = vld [vmem:[%s2770_s2 + $0x68] ss:$16 sps:$4 sm:$0xff]   ;;  %v2112_v23 = vld [vmem:[%s2770_s2 + $0x84] ss:$16 sps:$4 sm:$0xff]   ;;  %v2119_v24 = vld [vmem:[%s2770_s2 + $0x8c] ss:$16 sps:$4 sm:$0xff]  }
   0x9   :  { %137 = vmatprep.mubr.bf16.mxu0 %v2775_v1  ;;  %210 = vmatprep.mubr.bf16.mxu1 %v2775_v1  ;;  %v1804_v25 = vld [vmem:[%s2769_s0 + $0x10] sm:$0xff]   ;;  %v2135_v27 = vld [vmem:[%s2770_s2 + $0x88] ss:$16 sps:$4 sm:$0xff]   ;;  %v2146_v29 = vld [vmem:[%s2770_s2 + $0xac] ss:$16 sps:$4 sm:$0xff]  }
   0xa   :  { %v2128_v26 = vld [vmem:[%s2770_s2 + $0x80] ss:$16 sps:$4 sm:$0xff]   ;;  %v2140_v28 = vld [vmem:[%s2770_s2 + $0xa4] ss:$16 sps:$4 sm:$0xff]   ;;  %v2159_v31 = vld [vmem:[%s2770_s2 + $0xa8] ss:$16 sps:$4 sm:$0xff]  }
   0xb   :  { %590 = vmatpush1.bf16.msra.mxu0 %v2044_v12  ;;  %631 = vmatpush1.bf16.msra.mxu1 %v2049_v13  ;;  %v2154_v30 = vld [vmem:[%s2770_s2 + $0xa0] ss:$16 sps:$4 sm:$0xff]   ;;  %v2167_v32 = vld [vmem:[%s2770_s2 + $0xc4] ss:$16 sps:$4 sm:$0xff]   ;;  %v2174_v33 = vld [vmem:[%s2770_s2 + $0xcc] ss:$16 sps:$4 sm:$0xff]  }
   0xc   :  { %591 = vmatprep.subr.bf16.mxu0 %v2061_v15  ;;  %632 = vmatprep.subr.bf16.mxu1 %v2067_v16  ;;  %v1817_v34 = vld [vmem:[%s2769_s0 + $0x18] sm:$0xff]   ;;  %v2183_v35 = vld [vmem:[%s2770_s2 + $0xc0] ss:$16 sps:$4 sm:$0xff]   ;;  %v2195_v37 = vld [vmem:[%s2770_s2 + $0xe4] ss:$16 sps:$4 sm:$0xff]  }
   0xd   :  { %v2190_v36 = vld [vmem:[%s2770_s2 + $0xc8] ss:$16 sps:$4 sm:$0xff]   ;;  %v2201_v38 = vld [vmem:[%s2770_s2 + $0xec] ss:$16 sps:$4 sm:$0xff]   ;;  %v2209_v39 = vld [vmem:[%s2770_s2 + $0xe0] ss:$16 sps:$4 sm:$0xff]  }
   0xe   :  { %1659 = vmatmul.mubr.msk.bf16.gmra.mrb[4].mxu0 %vm82_vm0, %v1791_v14  ;;  %1663 = vmatmul.mubr.msk.bf16.gmra.mrb[4].mxu1 %vm82_vm0, %v1791_v14  ;;  %v2217_v40 = vld [vmem:[%s2770_s2 + $0xe8] ss:$16 sps:$4 sm:$0xff]  }
   0xf   :  { %592 = vmatpush1.bf16.msra.mxu0 %v2073_v17  ;;  %147 = vmatprep.mubr.bf16.mxu0 %v2775_v1 }
  0x10   :  { %633 = vmatpush1.bf16.msra.mxu1 %v2078_v18  ;;  %593 = vmatprep.subr.bf16.mxu0 %v2085_v19 }
  0x11   :  { %634 = vmatprep.subr.bf16.mxu1 %v2091_v20  ;;  %220 = vmatprep.mubr.bf16.mxu1 %v2775_v1 }
  0x13   :  { %594 = vmatpush1.bf16.msra.mxu0 %v2098_v21 }
  0x14   :  { %635 = vmatpush1.bf16.msra.mxu1 %v2104_v22  ;;  %595 = vmatprep.subr.bf16.mxu0 %v2112_v23 }
  0x15   :  { %636 = vmatprep.subr.bf16.mxu1 %v2119_v24 }
  0x16   :  { %1660 = vmatmul.mubr.msk.bf16.gmra.mrb[8].mxu0 %vm82_vm0, %v1804_v25  ;;  %1664 = vmatmul.mubr.msk.bf16.gmra.mrb[8].mxu1 %vm82_vm0, %v1804_v25 }
  0x17   :  { %596 = vmatpush1.bf16.msra.mxu0 %v2128_v26  ;;  %157 = vmatprep.mubr.bf16.mxu0 %v2775_v1 }
  0x18   :  { %637 = vmatpush1.bf16.msra.mxu1 %v2135_v27  ;;  %597 = vmatprep.subr.bf16.mxu0 %v2140_v28 }
  0x19   :  { %638 = vmatprep.subr.bf16.mxu1 %v2146_v29  ;;  %230 = vmatprep.mubr.bf16.mxu1 %v2775_v1 }
  0x1b   :  { %598 = vmatpush1.bf16.msra.mxu0 %v2154_v30 }
  0x1c   :  { %639 = vmatpush1.bf16.msra.mxu1 %v2159_v31  ;;  %599 = vmatprep.subr.bf16.mxu0 %v2167_v32 }
  0x1d   :  { %640 = vmatprep.subr.bf16.mxu1 %v2174_v33 }
  0x1e   :  { %1661 = vmatmul.mubr.msk.bf16.gmra.mrb[12].mxu0 %vm82_vm0, %v1817_v34  ;;  %1665 = vmatmul.mubr.msk.bf16.gmra.mrb[12].mxu1 %vm82_vm0, %v1817_v34 }
  0x1f   :  { %600 = vmatpush1.bf16.msra.mxu0 %v2183_v35  ;;  %619 = vmatprep.mubr.bf16.mxu0 %v2775_v1 }
  0x20   :  { %641 = vmatpush1.bf16.msra.mxu1 %v2190_v36  ;;  %601 = vmatprep.subr.bf16.mxu0 %v2195_v37 }
  0x21   :  { %642 = vmatprep.subr.bf16.mxu1 %v2201_v38  ;;  %660 = vmatprep.mubr.bf16.mxu1 %v2775_v1 }
  0x23   :  { %602 = vmatpush1.bf16.msra.mxu0 %v2209_v39 }
  0x24   :  { %643 = vmatpush1.bf16.msra.mxu1 %v2217_v40  ;;  %724 = vmatprep.subr.bf16.mxu0 %v2009_v6 }
  0x25   :  { %765 = vmatprep.subr.bf16.mxu1 %v2014_v7 }
  0x26   :  { %620 = vmatmul.mubr.bf16.vlgmr.msra.gmra.mrb[16].mxu0 %v1951_v41 }
  0x27   :  { %661 = vmatmul.mubr.bf16.vlgmr.msra.gmra.mrb[16].mxu1 %v1951_v41  ;;  %725 = vmatpush1.bf16.msra.mxu0 %v2019_v8 }
  0x28   :  { %766 = vmatpush1.bf16.msra.mxu1 %v2025_v9  ;;  %726 = vmatprep.subr.bf16.mxu0 %v2032_v10 }
  0x29   :  { %767 = vmatprep.subr.bf16.mxu1 %v2039_v11  ;;  %756 = vmatprep.mubr.bf16.mxu0 %v2775_v1 }
  0x2a   :  { %797 = vmatprep.mubr.bf16.mxu1 %v2775_v1 }
  0x2b   :  { %727 = vmatpush1.bf16.msra.mxu0 %v2044_v12 }
  0x2c   :  { %768 = vmatpush1.bf16.msra.mxu1 %v2049_v13  ;;  %728 = vmatprep.subr.bf16.mxu0 %v2061_v15 }
  0x2d   :  { %769 = vmatprep.subr.bf16.mxu1 %v2067_v16 }
  0x2f   :  { %729 = vmatpush1.bf16.msra.mxu0 %v2073_v17 }
  0x30   :  { %770 = vmatpush1.bf16.msra.mxu1 %v2078_v18  ;;  %730 = vmatprep.subr.bf16.mxu0 %v2085_v19 }
  0x31   :  { %771 = vmatprep.subr.bf16.mxu1 %v2091_v20 }
  0x33   :  { %731 = vmatpush1.bf16.msra.mxu0 %v2098_v21 }
  0x34   :  { %772 = vmatpush1.bf16.msra.mxu1 %v2104_v22  ;;  %732 = vmatprep.subr.bf16.mxu0 %v2112_v23 }
  0x35   :  { %773 = vmatprep.subr.bf16.mxu1 %v2119_v24 }
  0x37   :  { %733 = vmatpush1.bf16.msra.mxu0 %v2128_v26 }
  0x38   :  { %774 = vmatpush1.bf16.msra.mxu1 %v2135_v27  ;;  %734 = vmatprep.subr.bf16.mxu0 %v2140_v28 }
  0x39   :  { %775 = vmatprep.subr.bf16.mxu1 %v2146_v29 }
  0x3b   :  { %735 = vmatpush1.bf16.msra.mxu0 %v2154_v30 }
  0x3c   :  { %776 = vmatpush1.bf16.msra.mxu1 %v2159_v31  ;;  %736 = vmatprep.subr.bf16.mxu0 %v2167_v32 }
  0x3d   :  { %777 = vmatprep.subr.bf16.mxu1 %v2174_v33 }
  0x3f   :  { %737 = vmatpush1.bf16.msra.mxu0 %v2183_v35 }
  0x40   :  { %778 = vmatpush1.bf16.msra.mxu1 %v2190_v36  ;;  %738 = vmatprep.subr.bf16.mxu0 %v2195_v37 }
  0x41   :  { %779 = vmatprep.subr.bf16.mxu1 %v2201_v38 }
  0x43   :  { %739 = vmatpush1.bf16.msra.mxu0 %v2209_v39 }
  0x44   :  { %780 = vmatpush1.bf16.msra.mxu1 %v2217_v40  ;;  %840 = vmatprep.subr.bf16.mxu0 %v2009_v6 }
  0x45   :  { %881 = vmatprep.subr.bf16.mxu1 %v2014_v7 }
  0xd9   :  { %v129_v42 = vpop.f32.mrb[0].mxu0  ;;  %v202_v43 = vpop.f32.mrb[0].mxu1 }
  0xda   :  { %v131_v44 = vpop.f32.mrb[1].mxu0  ;;  %v204_v45 = vpop.f32.mrb[1].mxu1 }
  0xdb   :  { %v2259_v46 = vpack.c.bf16 %v131_v44, %v129_v42  ;;  %v133_v47 = vpop.f32.mrb[2].mxu0  ;;  %v2261_v48 = vpack.c.bf16 %v204_v45, %v202_v43  ;;  %v206_v49 = vpop.f32.mrb[2].mxu1  ;;  %v674_v45 = vlaneseq }
  0xdc   :  { %v135_v50 = vpop.f32.mrb[3].mxu0  ;;  %v208_v51 = vpop.f32.mrb[3].mxu1 }
  0xdd   :  { %v2263_v52 = vpack.c.bf16 %v135_v50, %v133_v47  ;;  %v2265_v53 = vpack.c.bf16 %v208_v51, %v206_v49  ;;  %v675_v50 = vshrl.u32 %v674_v45, 7 }
  0xdf   :  { %v684_v45 = vsub.s32 2, %v675_v50 }
  0xe1   :  { %v139_v54 = vpop.f32.mrb[4].mxu0  ;;  %v212_v55 = vpop.f32.mrb[4].mxu1 }
  0xe2   :  { %v141_v56 = vpop.f32.mrb[5].mxu0  ;;  %v214_v57 = vpop.f32.mrb[5].mxu1 }
  0xe3   :  { %v2267_v58 = vpack.c.bf16 %v141_v56, %v139_v54  ;;  %v143_v59 = vpop.f32.mrb[6].mxu0  ;;  %v2269_v60 = vpack.c.bf16 %v214_v57, %v212_v55  ;;  %v216_v61 = vpop.f32.mrb[6].mxu1 }
  0xe4   :  { %v145_v62 = vpop.f32.mrb[7].mxu0  ;;  %v218_v63 = vpop.f32.mrb[7].mxu1 }
  0xe5   :  { %v2271_v0 = vpack.c.bf16 %v145_v62, %v143_v59  ;;  %v2273_v2 = vpack.c.bf16 %v218_v63, %v216_v61 }
  0xe9   :  { %v149_v3 = vpop.f32.mrb[8].mxu0  ;;  %v222_v4 = vpop.f32.mrb[8].mxu1 }
  0xea   :  { %v151_v5 = vpop.f32.mrb[9].mxu0  ;;  %v224_v14 = vpop.f32.mrb[9].mxu1 }
  0xeb   :  { %v2275_v25 = vpack.c.bf16 %v151_v5, %v149_v3  ;;  %v153_v34 = vpop.f32.mrb[10].mxu0  ;;  %v2277_v41 = vpack.c.bf16 %v224_v14, %v222_v4  ;;  %v226_v42 = vpop.f32.mrb[10].mxu1  ;;  %v676_v4 = vsub.s32 0, %v675_v50 }
  0xec   :  { %v155_v43 = vpop.f32.mrb[11].mxu0  ;;  %v228_v44 = vpop.f32.mrb[11].mxu1 }
  0xed   :  { %2785 = vst [vmem:[#allocation5_spill] sm:$0xff] %v2275_v25  ;;  %2786 = vst [vmem:[#allocation6_spill] sm:$0xff] %v2277_v41  ;;  %v2279_v47 = vpack.c.bf16 %v155_v43, %v153_v34  ;;  %v2281_v49 = vpack.c.bf16 %v228_v44, %v226_v42  ;;  %v385_v34 = vld [vmem:[%s2771_s3] sm:$0xf]  ;;  %v680_v42 = vsub.s32 1, %v675_v50  ;;  %v390_v43 = vunpack.c.l.bf16 %v2259_v46 }
  0xee   :  { %v2295_v44 = vrot.slane %v385_v34, %v676_v4 }
  0xef   :  { %2787 = vst [vmem:[#allocation7_spill] sm:$0xff] %v2279_v47  ;;  %2788 = vst [vmem:[#allocation8_spill] sm:$0xff] %v2281_v49  ;;  %v688_v47 = vsub.s32 3, %v675_v50 }
  0xf1   :  { %v159_v51 = vpop.f32.mrb[12].mxu0  ;;  %v232_v54 = vpop.f32.mrb[12].mxu1 }
  0xf2   :  { %v161_v55 = vpop.f32.mrb[13].mxu0  ;;  %v234_v56 = vpop.f32.mrb[13].mxu1 }
  0xf3   :  { %v2283_v57 = vpack.c.bf16 %v161_v55, %v159_v51  ;;  %v163_v59 = vpop.f32.mrb[14].mxu0  ;;  %v2285_v61 = vpack.c.bf16 %v234_v56, %v232_v54  ;;  %v236_v62 = vpop.f32.mrb[14].mxu1  ;;  %v392_v54 = vunpack.c.l.bf16 %v2261_v48  ;;  %v391_v55 = vunpack.c.h.bf16 %v2259_v46 }
  0xf4   :  { %v165_v63 = vpop.f32.mrb[15].mxu0  ;;  %v238_v3 = vpop.f32.mrb[15].mxu1  ;;  %v2299_v56 = vrot.slane %v385_v34, %v680_v42 }
  0xf5   :  { %2789 = vst [vmem:[#allocation9_spill] sm:$0xff] %v2283_v57  ;;  %2790 = vst [vmem:[#allocation10_spill] sm:$0xff] %v2285_v61  ;;  %v2287_v5 = vpack.c.bf16 %v165_v63, %v163_v59  ;;  %v2289_v14 = vpack.c.bf16 %v238_v3, %v236_v62  ;;  %v393_v3 = vunpack.c.h.bf16 %v2261_v48  ;;  %v2303_v57 = vrot.slane %v385_v34, %v684_v45 }
  0xf7   :  { %2791 = vst [vmem:[#allocation11_spill] sm:$0xff] %v2287_v5  ;;  %2792 = vst [vmem:[#allocation12_spill] sm:$0xff] %v2289_v14 }
  0xf9   :  { %v621_v51 = vpop.f32.mrb[16].mxu0 }
  0xfa   :  { %v669_v59 = vadd.f32 %v621_v51, %v390_v43  ;;  %v662_v62 = vpop.f32.mrb[16].mxu1  ;;  %v623_v63 = vpop.f32.mrb[17].mxu0 }
  0xfb   :  { %v671_v1 = vadd.f32 %v662_v62, %v392_v54  ;;  %v670_v14 = vadd.f32 %v623_v63, %v391_v55  ;;  %v664_v5 = vpop.f32.mrb[17].mxu1  ;;  %v625_v61 = vpop.f32.mrb[18].mxu0  ;;  %v2307_v54 = vrot.slane %v385_v34, %v688_v47 }
  0xfc   :  { %v694_v4 = vadd.f32 %v2295_v44, %v669_v59  ;;  %v672_v49 = vadd.f32 %v664_v5, %v393_v3  ;;  %v626_v41 = vpop.f32.mrb[19].mxu0  ;;  %v666_v25 = vpop.f32.mrb[18].mxu1 }
  0xfd   :  { %v695_v46 = vadd.f32 %v2299_v56, %v670_v14  ;;  %v667_v42 = vpop.f32.mrb[19].mxu1  ;;  %v696_v48 = vadd.f32 %v2303_v57, %v671_v1 }
  0xfe   :  { %v698_v43 = vmul.f32 0.5, %v694_v4  ;;  %v697_v61 = vadd.f32 %v2307_v54, %v672_v49  ;;  %v2793_v42 = vmov 0  }
  0xff   :  { %v702_v51 = vmul.f32 0.5, %v695_v46 }
 0x100   :  { %1838 = vtanh.f32 %v698_v43  ;;  %v707_v45 = vmul.f32 0.5, %v697_v61  ;;  %v719_v43 = vunpack.c.l.bf16 %v2263_v52 }
 0x101   :  { %1840 = vtanh.f32 %v702_v51  ;;  %v721_v51 = vunpack.c.l.bf16 %v2265_v53 }
 0x102   :  { %1842 = vtanh.f32 %v696_v48 }
 0x103   :  { %1844 = vtanh.f32 %v707_v45  ;;  %v720_v45 = vunpack.c.h.bf16 %v2263_v52 }
 0x10a   :  { %v1839_v55 = vpop.eup %1838 }
 0x10b   :  { %v1841_v5 = vpop.eup %1840  ;;  %v700_v50 = vmul.f32 0.5, %v1839_v55  ;;  %v722_v55 = vunpack.c.h.bf16 %v2265_v53 }
 0x10c   :  { %v704_v41 = vmul.f32 0.5, %v1841_v5  ;;  %v1843_v14 = vpop.eup %1842 }
 0x10d   :  { %v701_v25 = vadd.f32 0.5, %v700_v50  ;;  %v1845_v1 = vpop.eup %1844 }
 0x10e   :  { %v705_v59 = vadd.f32 0.5, %v704_v41  ;;  %v709_v47 = vmul.f32 0.5, %v1845_v1 }
 0x10f   :  { %v712_v62 = vmul.f32 %v1843_v14, %v701_v25 }
 0x110   :  { %v711_v63 = vmul.f32 0.0, %v705_v59  ;;  %v710_v34 = vadd.f32 0.5, %v709_v47 }
 0x112   :  { %v2310_v3 = vadd.f32 %v712_v62, %v711_v63 }
 0x114   :  { %1846 = vtanh.f32 %v2310_v3 }
 0x11e   :  { %v1847_v4 = vpop.eup %1846 }
 0x11f   :  { %v715_v49 = vmul.f32 %v1847_v4, %v710_v34 }
 0x121   :  { %v723_v46 = vpack.c.bf16 %v715_v49, %v715_v49 }
 0x123   :  { %757 = vmatmul.mubr.bf16.vlgmr.msra.gmra.mrb[20].mxu0 %v723_v46  ;;  %798 = vmatmul.mubr.bf16.vlgmr.msra.gmra.mrb[20].mxu1 %v723_v46 }
 0x124   :  { %841 = vmatpush1.bf16.msra.mxu0 %v2019_v8  ;;  %882 = vmatpush1.bf16.msra.mxu1 %v2025_v9 }
 0x125   :  { %842 = vmatprep.subr.bf16.mxu0 %v2032_v10  ;;  %883 = vmatprep.subr.bf16.mxu1 %v2039_v11 }
 0x126   :  { %872 = vmatprep.mubr.bf16.mxu0 %v2793_v42  ;;  %913 = vmatprep.mubr.bf16.mxu1 %v2793_v42 }
 0x128   :  { %843 = vmatpush1.bf16.msra.mxu0 %v2044_v12  ;;  %884 = vmatpush1.bf16.msra.mxu1 %v2049_v13 }
 0x129   :  { %844 = vmatprep.subr.bf16.mxu0 %v2061_v15  ;;  %885 = vmatprep.subr.bf16.mxu1 %v2067_v16 }
 0x12c   :  { %845 = vmatpush1.bf16.msra.mxu0 %v2073_v17  ;;  %886 = vmatpush1.bf16.msra.mxu1 %v2078_v18 }
 0x12d   :  { %846 = vmatprep.subr.bf16.mxu0 %v2085_v19  ;;  %887 = vmatprep.subr.bf16.mxu1 %v2091_v20 }
 0x130   :  { %847 = vmatpush1.bf16.msra.mxu0 %v2098_v21  ;;  %888 = vmatpush1.bf16.msra.mxu1 %v2104_v22 }
 0x131   :  { %848 = vmatprep.subr.bf16.mxu0 %v2112_v23  ;;  %889 = vmatprep.subr.bf16.mxu1 %v2119_v24 }
 0x134   :  { %849 = vmatpush1.bf16.msra.mxu0 %v2128_v26  ;;  %890 = vmatpush1.bf16.msra.mxu1 %v2135_v27 }
 0x135   :  { %850 = vmatprep.subr.bf16.mxu0 %v2140_v28  ;;  %891 = vmatprep.subr.bf16.mxu1 %v2146_v29 }
 0x138   :  { %851 = vmatpush1.bf16.msra.mxu0 %v2154_v30  ;;  %892 = vmatpush1.bf16.msra.mxu1 %v2159_v31 }
 0x139   :  { %852 = vmatprep.subr.bf16.mxu0 %v2167_v32  ;;  %893 = vmatprep.subr.bf16.mxu1 %v2174_v33 }
 0x13c   :  { %853 = vmatpush1.bf16.msra.mxu0 %v2183_v35  ;;  %894 = vmatpush1.bf16.msra.mxu1 %v2190_v36 }
 0x13d   :  { %854 = vmatprep.subr.bf16.mxu0 %v2195_v37  ;;  %895 = vmatprep.subr.bf16.mxu1 %v2201_v38 }
 0x140   :  { %855 = vmatpush1.bf16.msra.mxu0 %v2209_v39  ;;  %896 = vmatpush1.bf16.msra.mxu1 %v2217_v40 }
 0x141   :  { %956 = vmatprep.subr.bf16.mxu0 %v2009_v6  ;;  %997 = vmatprep.subr.bf16.mxu1 %v2014_v7 }
 0x1f6   :  { %v758_v48 = vpop.f32.mrb[20].mxu0  ;;  %v799_v61 = vpop.f32.mrb[20].mxu1 }
 0x1f7   :  { %v806_v5 = vadd.f32 %v758_v48, %v719_v43  ;;  %v808_v50 = vadd.f32 %v799_v61, %v721_v51  ;;  %v760_v41 = vpop.f32.mrb[21].mxu0  ;;  %v801_v25 = vpop.f32.mrb[21].mxu1 }
 0x1f8   :  { %v807_v14 = vadd.f32 %v760_v41, %v720_v45  ;;  %v809_v59 = vadd.f32 %v801_v25, %v722_v55  ;;  %v762_v62 = vpop.f32.mrb[22].mxu0  ;;  %v803_v63 = vpop.f32.mrb[22].mxu1 }
 0x1f9   :  { %v810_v1 = vadd.f32 %v806_v5, %v2295_v44  ;;  %v763_v47 = vpop.f32.mrb[23].mxu0  ;;  %v804_v34 = vpop.f32.mrb[23].mxu1  ;;  %v812_v52 = vadd.f32 %v808_v50, %v2303_v57 }
 0x1fa   :  { %v811_v4 = vadd.f32 %v807_v14, %v2299_v56  ;;  %v813_v53 = vadd.f32 %v809_v59, %v2307_v54 }
 0x1fb   :  { %v814_v49 = vmul.f32 0.5, %v810_v1 }
 0x1fc   :  { %v818_v46 = vmul.f32 0.5, %v811_v4  ;;  %v823_v43 = vmul.f32 0.5, %v813_v53  ;;  %v837_v4 = vunpack.c.l.bf16 %v2269_v60  ;;  %v838_v53 = vunpack.c.h.bf16 %v2269_v60 }
 0x1fd   :  { %1848 = vtanh.f32 %v814_v49 }
 0x1fe   :  { %1850 = vtanh.f32 %v818_v46 }
 0x1ff   :  { %1852 = vtanh.f32 %v812_v52  ;;  %v836_v52 = vunpack.c.h.bf16 %v2267_v58 }
 0x200   :  { %1854 = vtanh.f32 %v823_v43 }
 0x207   :  { %v1849_v51 = vpop.eup %1848 }
 0x208   :  { %v1851_v48 = vpop.eup %1850  ;;  %v816_v61 = vmul.f32 0.5, %v1849_v51 }
 0x209   :  { %v820_v45 = vmul.f32 0.5, %v1851_v48  ;;  %v1853_v5 = vpop.eup %1852 }
 0x20a   :  { %v817_v55 = vadd.f32 0.5, %v816_v61  ;;  %v1855_v50 = vpop.eup %1854 }
 0x20b   :  { %v821_v41 = vadd.f32 0.5, %v820_v45  ;;  %v825_v63 = vmul.f32 0.5, %v1855_v50 }
 0x20c   :  { %v828_v25 = vmul.f32 %v1853_v5, %v817_v55 }
 0x20d   :  { %v827_v14 = vmul.f32 %v821_v41, %v2310_v3  ;;  %v826_v1 = vadd.f32 0.5, %v825_v63  ;;  %v835_v3 = vunpack.c.l.bf16 %v2267_v58 }
 0x20f   :  { %v2356_v62 = vadd.f32 %v828_v25, %v827_v14 }
 0x211   :  { %1856 = vtanh.f32 %v2356_v62 }
 0x21b   :  { %v1857_v59 = vpop.eup %1856 }
 0x21c   :  { %v831_v47 = vmul.f32 %v1857_v59, %v826_v1 }
 0x21e   :  { %v839_v34 = vpack.c.bf16 %v831_v47, %v831_v47 }
 0x220   :  { %873 = vmatmul.mubr.bf16.vlgmr.msra.gmra.mrb[24].mxu0 %v839_v34  ;;  %914 = vmatmul.mubr.bf16.vlgmr.msra.gmra.mrb[24].mxu1 %v839_v34 }
 0x221   :  { %957 = vmatpush1.bf16.msra.mxu0 %v2019_v8  ;;  %998 = vmatpush1.bf16.msra.mxu1 %v2025_v9 }
 0x222   :  { %958 = vmatprep.subr.bf16.mxu0 %v2032_v10  ;;  %999 = vmatprep.subr.bf16.mxu1 %v2039_v11 }
 0x223   :  { %988 = vmatprep.mubr.bf16.mxu0 %v2793_v42  ;;  %1029 = vmatprep.mubr.bf16.mxu1 %v2793_v42 }
 0x225   :  { %959 = vmatpush1.bf16.msra.mxu0 %v2044_v12  ;;  %1000 = vmatpush1.bf16.msra.mxu1 %v2049_v13 }
 0x226   :  { %960 = vmatprep.subr.bf16.mxu0 %v2061_v15  ;;  %1001 = vmatprep.subr.bf16.mxu1 %v2067_v16 }
 0x229   :  { %961 = vmatpush1.bf16.msra.mxu0 %v2073_v17  ;;  %1002 = vmatpush1.bf16.msra.mxu1 %v2078_v18 }
 0x22a   :  { %962 = vmatprep.subr.bf16.mxu0 %v2085_v19  ;;  %1003 = vmatprep.subr.bf16.mxu1 %v2091_v20 }
 0x22d   :  { %963 = vmatpush1.bf16.msra.mxu0 %v2098_v21  ;;  %1004 = vmatpush1.bf16.msra.mxu1 %v2104_v22 }
 0x22e   :  { %964 = vmatprep.subr.bf16.mxu0 %v2112_v23  ;;  %1005 = vmatprep.subr.bf16.mxu1 %v2119_v24 }
 0x231   :  { %965 = vmatpush1.bf16.msra.mxu0 %v2128_v26  ;;  %1006 = vmatpush1.bf16.msra.mxu1 %v2135_v27 }
 0x232   :  { %966 = vmatprep.subr.bf16.mxu0 %v2140_v28  ;;  %1007 = vmatprep.subr.bf16.mxu1 %v2146_v29 }
 0x235   :  { %967 = vmatpush1.bf16.msra.mxu0 %v2154_v30  ;;  %1008 = vmatpush1.bf16.msra.mxu1 %v2159_v31 }
 0x236   :  { %968 = vmatprep.subr.bf16.mxu0 %v2167_v32  ;;  %1009 = vmatprep.subr.bf16.mxu1 %v2174_v33 }
 0x239   :  { %969 = vmatpush1.bf16.msra.mxu0 %v2183_v35  ;;  %1010 = vmatpush1.bf16.msra.mxu1 %v2190_v36 }
 0x23a   :  { %970 = vmatprep.subr.bf16.mxu0 %v2195_v37  ;;  %1011 = vmatprep.subr.bf16.mxu1 %v2201_v38 }
 0x23d   :  { %971 = vmatpush1.bf16.msra.mxu0 %v2209_v39  ;;  %1012 = vmatpush1.bf16.msra.mxu1 %v2217_v40 }
 0x23e   :  { %1072 = vmatprep.subr.bf16.mxu0 %v2009_v6  ;;  %1113 = vmatprep.subr.bf16.mxu1 %v2014_v7 }
 0x2f3   :  { %v874_v49 = vpop.f32.mrb[24].mxu0  ;;  %v915_v46 = vpop.f32.mrb[24].mxu1 }
 0x2f4   :  { %v922_v43 = vadd.f32 %v874_v49, %v835_v3  ;;  %v924_v51 = vadd.f32 %v915_v46, %v837_v4  ;;  %v876_v48 = vpop.f32.mrb[25].mxu0  ;;  %v917_v61 = vpop.f32.mrb[25].mxu1 }
 0x2f5   :  { %v923_v45 = vadd.f32 %v876_v48, %v836_v52  ;;  %v925_v55 = vadd.f32 %v917_v61, %v838_v53  ;;  %v878_v5 = vpop.f32.mrb[26].mxu0  ;;  %v919_v41 = vpop.f32.mrb[26].mxu1 }
 0x2f6   :  { %v926_v25 = vadd.f32 %v922_v43, %v2295_v44  ;;  %v879_v14 = vpop.f32.mrb[27].mxu0  ;;  %v920_v50 = vpop.f32.mrb[27].mxu1  ;;  %v928_v58 = vadd.f32 %v924_v51, %v2303_v57 }
 0x2f7   :  { %v927_v63 = vadd.f32 %v923_v45, %v2299_v56  ;;  %v929_v60 = vadd.f32 %v925_v55, %v2307_v54  ;;  %v953_v14 = vunpack.c.l.bf16 %v2273_v2 }
 0x2f8   :  { %v930_v1 = vmul.f32 0.5, %v926_v25 }
 0x2f9   :  { %v934_v59 = vmul.f32 0.5, %v927_v63  ;;  %v939_v47 = vmul.f32 0.5, %v929_v60 }
 0x2fa   :  { %1858 = vtanh.f32 %v930_v1  ;;  %v952_v1 = vunpack.c.h.bf16 %v2271_v0 }
 0x2fb   :  { %1860 = vtanh.f32 %v934_v59  ;;  %v954_v59 = vunpack.c.h.bf16 %v2273_v2 }
 0x2fc   :  { %1862 = vtanh.f32 %v928_v58 }
 0x2fd   :  { %1864 = vtanh.f32 %v939_v47 }
 0x304   :  { %v1859_v34 = vpop.eup %1858 }
 0x305   :  { %v1861_v3 = vpop.eup %1860  ;;  %v932_v4 = vmul.f32 0.5, %v1859_v34 }
 0x306   :  { %v936_v49 = vmul.f32 0.5, %v1861_v3  ;;  %v1863_v52 = vpop.eup %1862 }
 0x307   :  { %v933_v46 = vadd.f32 0.5, %v932_v4  ;;  %v1865_v51 = vpop.eup %1864 }
 0x308   :  { %v937_v53 = vadd.f32 0.5, %v936_v49  ;;  %v941_v45 = vmul.f32 0.5, %v1865_v51 }
 0x309   :  { %v944_v43 = vmul.f32 %v1863_v52, %v933_v46 }
 0x30a   :  { %v943_v48 = vmul.f32 %v937_v53, %v2356_v62  ;;  %v942_v5 = vadd.f32 0.5, %v941_v45  ;;  %v951_v62 = vunpack.c.l.bf16 %v2271_v0 }
 0x30c   :  { %v2402_v61 = vadd.f32 %v944_v43, %v943_v48 }
 0x30e   :  { %1866 = vtanh.f32 %v2402_v61 }
 0x318   :  { %v1867_v55 = vpop.eup %1866 }
 0x319   :  { %v947_v41 = vmul.f32 %v1867_v55, %v942_v5 }
 0x31b   :  { %v955_v25 = vpack.c.bf16 %v947_v41, %v947_v41 }
 0x31d   :  { %989 = vmatmul.mubr.bf16.vlgmr.msra.gmra.mrb[28].mxu0 %v955_v25  ;;  %1030 = vmatmul.mubr.bf16.vlgmr.msra.gmra.mrb[28].mxu1 %v955_v25 }
 0x31e   :  { %1073 = vmatpush1.bf16.msra.mxu0 %v2019_v8  ;;  %1114 = vmatpush1.bf16.msra.mxu1 %v2025_v9 }
 0x31f   :  { %1074 = vmatprep.subr.bf16.mxu0 %v2032_v10  ;;  %1115 = vmatprep.subr.bf16.mxu1 %v2039_v11 }
 0x320   :  { %1104 = vmatprep.mubr.bf16.mxu0 %v2793_v42  ;;  %1145 = vmatprep.mubr.bf16.mxu1 %v2793_v42 }
 0x322   :  { %1075 = vmatpush1.bf16.msra.mxu0 %v2044_v12  ;;  %1116 = vmatpush1.bf16.msra.mxu1 %v2049_v13 }
 0x323   :  { %1076 = vmatprep.subr.bf16.mxu0 %v2061_v15  ;;  %1117 = vmatprep.subr.bf16.mxu1 %v2067_v16 }
 0x326   :  { %1077 = vmatpush1.bf16.msra.mxu0 %v2073_v17  ;;  %1118 = vmatpush1.bf16.msra.mxu1 %v2078_v18 }
 0x327   :  { %1078 = vmatprep.subr.bf16.mxu0 %v2085_v19  ;;  %1119 = vmatprep.subr.bf16.mxu1 %v2091_v20 }
 0x32a   :  { %1079 = vmatpush1.bf16.msra.mxu0 %v2098_v21  ;;  %1120 = vmatpush1.bf16.msra.mxu1 %v2104_v22 }
 0x32b   :  { %1080 = vmatprep.subr.bf16.mxu0 %v2112_v23  ;;  %1121 = vmatprep.subr.bf16.mxu1 %v2119_v24 }
 0x32e   :  { %1081 = vmatpush1.bf16.msra.mxu0 %v2128_v26  ;;  %1122 = vmatpush1.bf16.msra.mxu1 %v2135_v27 }
 0x32f   :  { %1082 = vmatprep.subr.bf16.mxu0 %v2140_v28  ;;  %1123 = vmatprep.subr.bf16.mxu1 %v2146_v29 }
 0x332   :  { %1083 = vmatpush1.bf16.msra.mxu0 %v2154_v30  ;;  %1124 = vmatpush1.bf16.msra.mxu1 %v2159_v31 }
 0x333   :  { %1084 = vmatprep.subr.bf16.mxu0 %v2167_v32  ;;  %1125 = vmatprep.subr.bf16.mxu1 %v2174_v33 }
 0x336   :  { %1085 = vmatpush1.bf16.msra.mxu0 %v2183_v35  ;;  %1126 = vmatpush1.bf16.msra.mxu1 %v2190_v36 }
 0x337   :  { %1086 = vmatprep.subr.bf16.mxu0 %v2195_v37  ;;  %1127 = vmatprep.subr.bf16.mxu1 %v2201_v38 }
 0x33a   :  { %1087 = vmatpush1.bf16.msra.mxu0 %v2209_v39  ;;  %1128 = vmatpush1.bf16.msra.mxu1 %v2217_v40 }
 0x33b   :  { %1188 = vmatprep.subr.bf16.mxu0 %v2009_v6  ;;  %1229 = vmatprep.subr.bf16.mxu1 %v2014_v7 }
 0x3f0   :  { %v990_v50 = vpop.f32.mrb[28].mxu0  ;;  %v1031_v63 = vpop.f32.mrb[28].mxu1 }
 0x3f1   :  { %v1038_v58 = vadd.f32 %v990_v50, %v951_v62  ;;  %v1040_v60 = vadd.f32 %v1031_v63, %v953_v14  ;;  %v992_v47 = vpop.f32.mrb[29].mxu0  ;;  %v1033_v34 = vpop.f32.mrb[29].mxu1 }
 0x3f2   :  { %v1039_v3 = vadd.f32 %v992_v47, %v952_v1  ;;  %v1041_v4 = vadd.f32 %v1033_v34, %v954_v59  ;;  %v994_v49 = vpop.f32.mrb[30].mxu0  ;;  %v1035_v6 = vpop.f32.mrb[30].mxu1 }
 0x3f3   :  { %v1042_v7 = vadd.f32 %v1038_v58, %v2295_v44  ;;  %v995_v46 = vpop.f32.mrb[31].mxu0  ;;  %v1036_v52 = vpop.f32.mrb[31].mxu1  ;;  %v1044_v0 = vadd.f32 %v1040_v60, %v2303_v57 }
 0x3f4   :  { %v1043_v53 = vadd.f32 %v1039_v3, %v2299_v56  ;;  %v1045_v2 = vadd.f32 %v1041_v4, %v2307_v54 }
 0x3f5   :  { %v1046_v43 = vmul.f32 0.5, %v1042_v7 }
 0x3f6   :  { %v1050_v48 = vmul.f32 0.5, %v1043_v53  ;;  %v1055_v51 = vmul.f32 0.5, %v1045_v2 }
 0x3f7   :  { %1868 = vtanh.f32 %v1046_v43 }
 0x3f8   :  { %1870 = vtanh.f32 %v1050_v48 }
 0x3f9   :  { %1872 = vtanh.f32 %v1044_v0 }
 0x3fa   :  { %1874 = vtanh.f32 %v1055_v51 }
 0x401   :  { %v1869_v45 = vpop.eup %1868 }
 0x402   :  { %v1871_v5 = vpop.eup %1870  ;;  %v1048_v55 = vmul.f32 0.5, %v1869_v45 }
 0x403   :  { %v1052_v41 = vmul.f32 0.5, %v1871_v5  ;;  %v1873_v62 = vpop.eup %1872 }
 0x404   :  { %v1049_v25 = vadd.f32 0.5, %v1048_v55  ;;  %v1875_v59 = vpop.eup %1874 }
 0x405   :  { %v1053_v14 = vadd.f32 0.5, %v1052_v41  ;;  %v1057_v58 = vmul.f32 0.5, %v1875_v59  ;;  %v2536_v59 = vld [vmem:[%s2770_s2 + $0x20] ss:$16 sps:$4 sm:$0xff]  }
 0x406   :  { %v1060_v50 = vmul.f32 %v1873_v62, %v1049_v25 }
 0x407   :  { %v1059_v63 = vmul.f32 %v1053_v14, %v2402_v61  ;;  %v1058_v60 = vadd.f32 0.5, %v1057_v58  ;;  %v2510_v14 = vld [vmem:[%s2770_s2] ss:$16 sps:$4 sm:$0xff]   ;;  %v2542_v58 = vld [vmem:[%s2770_s2 + $0x28] ss:$16 sps:$4 sm:$0xff]  }
 0x409   :  { %v2448_v1 = vadd.f32 %v1060_v50, %v1059_v63  ;;  %v2516_v50 = vld [vmem:[%s2770_s2 + $0x8] ss:$16 sps:$4 sm:$0xff]   ;;  %v2522_v63 = vld [vmem:[%s2770_s2 + $0x24] ss:$16 sps:$4 sm:$0xff]  }
 0x40b   :  { %1876 = vtanh.f32 %v2448_v1 }
 0x415   :  { %v1877_v47 = vpop.eup %1876 }
 0x416   :  { %v1063_v34 = vmul.f32 %v1877_v47, %v1058_v60  ;;  %v2548_v60 = vld [vmem:[%s2770_s2 + $0x44] ss:$16 sps:$4 sm:$0xff]   ;;  %v2554_v47 = vld [vmem:[%s2770_s2 + $0x4c] ss:$16 sps:$4 sm:$0xff]  }
 0x418   :  { %v1071_v3 = vpack.c.bf16 %v1063_v34, %v1063_v34  ;;  %v2560_v34 = vld [vmem:[%s2770_s2 + $0x40] ss:$16 sps:$4 sm:$0xff]  }
 0x41a   :  { %1105 = vmatmul.mubr.bf16.vlgmr.msra.gmra.mrb[32].mxu0 %v1071_v3  ;;  %1146 = vmatmul.mubr.bf16.vlgmr.msra.gmra.mrb[32].mxu1 %v1071_v3  ;;  %v2566_v3 = vld [vmem:[%s2770_s2 + $0x48] ss:$16 sps:$4 sm:$0xff]  }
 0x41b   :  { %1189 = vmatpush1.bf16.msra.mxu0 %v2019_v8  ;;  %1230 = vmatpush1.bf16.msra.mxu1 %v2025_v9  ;;  %v2486_v8 = vld [vmem:[%s2770_s2 + $0x4] ss:$16 sps:$4 sm:$0xff]   ;;  %v2492_v9 = vld [vmem:[%s2770_s2 + $0xc] ss:$16 sps:$4 sm:$0xff]  }
 0x41c   :  { %1190 = vmatprep.subr.bf16.mxu0 %v2032_v10  ;;  %1231 = vmatprep.subr.bf16.mxu1 %v2039_v11  ;;  %v2794_v10 = vld [vmem:[#allocation5_spill] sm:$0xff] }
 0x41d   :  { %1220 = vmatprep.mubr.bf16.mxu0 %v2793_v42  ;;  %1261 = vmatprep.mubr.bf16.mxu1 %v2793_v42  ;;  %v1067_v11 = vunpack.c.l.bf16 %v2794_v10 }
 0x41f   :  { %1191 = vmatpush1.bf16.msra.mxu0 %v2044_v12  ;;  %1232 = vmatpush1.bf16.msra.mxu1 %v2049_v13  ;;  %v2795_v12 = vld [vmem:[#allocation6_spill] sm:$0xff] }
 0x420   :  { %1192 = vmatprep.subr.bf16.mxu0 %v2061_v15  ;;  %1233 = vmatprep.subr.bf16.mxu1 %v2067_v16  ;;  %v1069_v13 = vunpack.c.l.bf16 %v2795_v12 }
 0x423   :  { %1193 = vmatpush1.bf16.msra.mxu0 %v2073_v17  ;;  %1234 = vmatpush1.bf16.msra.mxu1 %v2078_v18  ;;  %v1068_v17 = vunpack.c.h.bf16 %v2794_v10  ;;  %v1070_v18 = vunpack.c.h.bf16 %v2795_v12  ;;  %v2572_v10 = vld [vmem:[%s2770_s2 + $0x64] ss:$16 sps:$4 sm:$0xff]   ;;  %v2584_v12 = vld [vmem:[%s2770_s2 + $0x60] ss:$16 sps:$4 sm:$0xff]  }
 0x424   :  { %1194 = vmatprep.subr.bf16.mxu0 %v2085_v19  ;;  %1235 = vmatprep.subr.bf16.mxu1 %v2091_v20 }
 0x427   :  { %1195 = vmatpush1.bf16.msra.mxu0 %v2098_v21  ;;  %1236 = vmatpush1.bf16.msra.mxu1 %v2104_v22 }
 0x428   :  { %1196 = vmatprep.subr.bf16.mxu0 %v2112_v23  ;;  %1237 = vmatprep.subr.bf16.mxu1 %v2119_v24 }
 0x42b   :  { %1197 = vmatpush1.bf16.msra.mxu0 %v2128_v26  ;;  %1238 = vmatpush1.bf16.msra.mxu1 %v2135_v27 }
 0x42c   :  { %1198 = vmatprep.subr.bf16.mxu0 %v2140_v28  ;;  %1239 = vmatprep.subr.bf16.mxu1 %v2146_v29 }
 0x42f   :  { %1199 = vmatpush1.bf16.msra.mxu0 %v2154_v30  ;;  %1240 = vmatpush1.bf16.msra.mxu1 %v2159_v31 }
 0x430   :  { %1200 = vmatprep.subr.bf16.mxu0 %v2167_v32  ;;  %1241 = vmatprep.subr.bf16.mxu1 %v2174_v33 }
 0x433   :  { %1201 = vmatpush1.bf16.msra.mxu0 %v2183_v35  ;;  %1242 = vmatpush1.bf16.msra.mxu1 %v2190_v36 }
 0x434   :  { %1202 = vmatprep.subr.bf16.mxu0 %v2195_v37  ;;  %1243 = vmatprep.subr.bf16.mxu1 %v2201_v38 }
 0x437   :  { %1203 = vmatpush1.bf16.msra.mxu0 %v2209_v39  ;;  %1244 = vmatpush1.bf16.msra.mxu1 %v2217_v40 }
 0x438   :  { %1304 = vmatprep.subr.bf16.mxu0 %v2486_v8  ;;  %1345 = vmatprep.subr.bf16.mxu1 %v2492_v9 }
 0x4ed   :  { %v1106_v15 = vpop.f32.mrb[32].mxu0  ;;  %v1147_v16 = vpop.f32.mrb[32].mxu1 }
 0x4ee   :  { %v1154_v19 = vadd.f32 %v1106_v15, %v1067_v11  ;;  %v1156_v20 = vadd.f32 %v1147_v16, %v1069_v13  ;;  %v1108_v21 = vpop.f32.mrb[33].mxu0  ;;  %v1149_v22 = vpop.f32.mrb[33].mxu1  ;;  %v2578_v11 = vld [vmem:[%s2770_s2 + $0x6c] ss:$16 sps:$4 sm:$0xff]   ;;  %v2590_v13 = vld [vmem:[%s2770_s2 + $0x68] ss:$16 sps:$4 sm:$0xff]  }
 0x4ef   :  { %v1155_v23 = vadd.f32 %v1108_v21, %v1068_v17  ;;  %v1157_v24 = vadd.f32 %v1149_v22, %v1070_v18  ;;  %v1110_v26 = vpop.f32.mrb[34].mxu0  ;;  %v1151_v27 = vpop.f32.mrb[34].mxu1  ;;  %v2596_v15 = vld [vmem:[%s2770_s2 + $0x84] ss:$16 sps:$4 sm:$0xff]   ;;  %v2602_v16 = vld [vmem:[%s2770_s2 + $0x8c] ss:$16 sps:$4 sm:$0xff]  }
 0x4f0   :  { %v1158_v28 = vadd.f32 %v1154_v19, %v2295_v44  ;;  %v1111_v29 = vpop.f32.mrb[35].mxu0  ;;  %v1152_v30 = vpop.f32.mrb[35].mxu1  ;;  %v1160_v61 = vadd.f32 %v1156_v20, %v2303_v57  ;;  %v2608_v17 = vld [vmem:[%s2770_s2 + $0x80] ss:$16 sps:$4 sm:$0xff]   ;;  %v2614_v18 = vld [vmem:[%s2770_s2 + $0x88] ss:$16 sps:$4 sm:$0xff]  }
 0x4f1   :  { %v1159_v31 = vadd.f32 %v1155_v23, %v2299_v56  ;;  %v1161_v4 = vadd.f32 %v1157_v24, %v2307_v54  ;;  %v2620_v19 = vld [vmem:[%s2770_s2 + $0xa4] ss:$16 sps:$4 sm:$0xff]   ;;  %v2626_v20 = vld [vmem:[%s2770_s2 + $0xac] ss:$16 sps:$4 sm:$0xff]   ;;  %v2632_v21 = vld [vmem:[%s2770_s2 + $0xa0] ss:$16 sps:$4 sm:$0xff]  }
 0x4f2   :  { %v1162_v32 = vmul.f32 0.5, %v1158_v28  ;;  %v2638_v22 = vld [vmem:[%s2770_s2 + $0xa8] ss:$16 sps:$4 sm:$0xff]   ;;  %v2644_v23 = vld [vmem:[%s2770_s2 + $0xc4] ss:$16 sps:$4 sm:$0xff]  }
 0x4f3   :  { %v1166_v33 = vmul.f32 0.5, %v1159_v31  ;;  %v1171_v49 = vmul.f32 0.5, %v1161_v4  ;;  %v2650_v24 = vld [vmem:[%s2770_s2 + $0xcc] ss:$16 sps:$4 sm:$0xff]   ;;  %v2796_v26 = vld [vmem:[#allocation7_spill] sm:$0xff] }
 0x4f4   :  { %1878 = vtanh.f32 %v1162_v32  ;;  %v1183_v27 = vunpack.c.l.bf16 %v2796_v26  ;;  %v2797_v28 = vld [vmem:[#allocation8_spill] sm:$0xff] }
 0x4f5   :  { %1880 = vtanh.f32 %v1166_v33  ;;  %v1185_v29 = vunpack.c.l.bf16 %v2797_v28 }
 0x4f6   :  { %1882 = vtanh.f32 %v1160_v61 }
 0x4f7   :  { %1884 = vtanh.f32 %v1171_v49 }
 0x4fe   :  { %v1879_v6 = vpop.eup %1878 }
 0x4ff   :  { %v1881_v7 = vpop.eup %1880  ;;  %v1164_v46 = vmul.f32 0.5, %v1879_v6 }
 0x500   :  { %v1168_v52 = vmul.f32 0.5, %v1881_v7  ;;  %v1883_v43 = vpop.eup %1882 }
 0x501   :  { %v1165_v53 = vadd.f32 0.5, %v1164_v46  ;;  %v1885_v45 = vpop.eup %1884 }
 0x502   :  { %v1169_v48 = vadd.f32 0.5, %v1168_v52  ;;  %v1173_v5 = vmul.f32 0.5, %v1885_v45 }
 0x503   :  { %v1176_v0 = vmul.f32 %v1883_v43, %v1165_v53 }
 0x504   :  { %v1175_v2 = vmul.f32 %v1169_v48, %v2448_v1  ;;  %v1174_v55 = vadd.f32 0.5, %v1173_v5  ;;  %v2528_v1 = vld [vmem:[%s2770_s2 + $0x2c] ss:$16 sps:$4 sm:$0xff]  }
 0x506   :  { %v2504_v51 = vadd.f32 %v1176_v0, %v1175_v2 }
 0x508   :  { %1886 = vtanh.f32 %v2504_v51 }
 0x512   :  { %v1887_v41 = vpop.eup %1886 }
 0x513   :  { %v1179_v25 = vmul.f32 %v1887_v41, %v1174_v55 }
 0x515   :  { %v1187_v62 = vpack.c.bf16 %v1179_v25, %v1179_v25 }
 0x517   :  { %1221 = vmatmul.mubr.bf16.vlgmr.msra.gmra.mrb[36].mxu0 %v1187_v62  ;;  %1262 = vmatmul.mubr.bf16.vlgmr.msra.gmra.mrb[36].mxu1 %v1187_v62 }
 0x518   :  { %1305 = vmatpush1.bf16.msra.mxu0 %v2510_v14  ;;  %1346 = vmatpush1.bf16.msra.mxu1 %v2516_v50 }
 0x519   :  { %1306 = vmatprep.subr.bf16.mxu0 %v2522_v63  ;;  %1347 = vmatprep.subr.bf16.mxu1 %v2528_v1 }
 0x51a   :  { %1336 = vmatprep.mubr.bf16.mxu0 %v2793_v42  ;;  %1377 = vmatprep.mubr.bf16.mxu1 %v2793_v42 }
 0x51c   :  { %1307 = vmatpush1.bf16.msra.mxu0 %v2536_v59  ;;  %1348 = vmatpush1.bf16.msra.mxu1 %v2542_v58 }
 0x51d   :  { %1308 = vmatprep.subr.bf16.mxu0 %v2548_v60  ;;  %1349 = vmatprep.subr.bf16.mxu1 %v2554_v47 }
 0x520   :  { %1309 = vmatpush1.bf16.msra.mxu0 %v2560_v34  ;;  %1350 = vmatpush1.bf16.msra.mxu1 %v2566_v3 }
 0x521   :  { %1310 = vmatprep.subr.bf16.mxu0 %v2572_v10  ;;  %1351 = vmatprep.subr.bf16.mxu1 %v2578_v11 }
 0x524   :  { %1311 = vmatpush1.bf16.msra.mxu0 %v2584_v12  ;;  %1352 = vmatpush1.bf16.msra.mxu1 %v2590_v13 }
 0x525   :  { %1312 = vmatprep.subr.bf16.mxu0 %v2596_v15  ;;  %1353 = vmatprep.subr.bf16.mxu1 %v2602_v16 }
 0x528   :  { %1313 = vmatpush1.bf16.msra.mxu0 %v2608_v17  ;;  %1354 = vmatpush1.bf16.msra.mxu1 %v2614_v18 }
 0x529   :  { %1314 = vmatprep.subr.bf16.mxu0 %v2620_v19  ;;  %1355 = vmatprep.subr.bf16.mxu1 %v2626_v20 }
 0x52c   :  { %1315 = vmatpush1.bf16.msra.mxu0 %v2632_v21  ;;  %1356 = vmatpush1.bf16.msra.mxu1 %v2638_v22 }
 0x52d   :  { %1316 = vmatprep.subr.bf16.mxu0 %v2644_v23  ;;  %1357 = vmatprep.subr.bf16.mxu1 %v2650_v24 }
 0x530   :  { %1317 = vmatpush1.bf16.msra.mxu0 %v2183_v35  ;;  %1358 = vmatpush1.bf16.msra.mxu1 %v2190_v36  ;;  %v1184_v36 = vunpack.c.h.bf16 %v2796_v26 }
 0x531   :  { %1318 = vmatprep.subr.bf16.mxu0 %v2195_v37  ;;  %1359 = vmatprep.subr.bf16.mxu1 %v2201_v38  ;;  %v1186_v37 = vunpack.c.h.bf16 %v2797_v28 }
 0x534   :  { %1319 = vmatpush1.bf16.msra.mxu0 %v2209_v39  ;;  %1360 = vmatpush1.bf16.msra.mxu1 %v2217_v40 }
 0x535   :  { %1420 = vmatprep.subr.bf16.mxu0 %v2486_v8  ;;  %1461 = vmatprep.subr.bf16.mxu1 %v2492_v9 }
 0x5ea   :  { %v1222_v30 = vpop.f32.mrb[36].mxu0  ;;  %v1263_v35 = vpop.f32.mrb[36].mxu1 }
 0x5eb   :  { %v1270_v31 = vadd.f32 %v1222_v30, %v1183_v27  ;;  %v1272_v38 = vadd.f32 %v1263_v35, %v1185_v29  ;;  %v1224_v32 = vpop.f32.mrb[37].mxu0  ;;  %v1265_v39 = vpop.f32.mrb[37].mxu1 }
 0x5ec   :  { %v1271_v33 = vadd.f32 %v1224_v32, %v1184_v36  ;;  %v1273_v40 = vadd.f32 %v1265_v39, %v1186_v37  ;;  %v1226_v61 = vpop.f32.mrb[38].mxu0  ;;  %v1267_v8 = vpop.f32.mrb[38].mxu1 }
 0x5ed   :  { %v1274_v9 = vadd.f32 %v1270_v31, %v2295_v44  ;;  %v1227_v4 = vpop.f32.mrb[39].mxu0  ;;  %v1268_v49 = vpop.f32.mrb[39].mxu1  ;;  %v1276_v52 = vadd.f32 %v1272_v38, %v2303_v57 }
 0x5ee   :  { %v1275_v6 = vadd.f32 %v1271_v33, %v2299_v56  ;;  %v1277_v53 = vadd.f32 %v1273_v40, %v2307_v54 }
 0x5ef   :  { %v1278_v7 = vmul.f32 0.5, %v1274_v9 }
 0x5f0   :  { %v1282_v46 = vmul.f32 0.5, %v1275_v6  ;;  %v1287_v43 = vmul.f32 0.5, %v1277_v53 }
 0x5f1   :  { %1888 = vtanh.f32 %v1278_v7 }
 0x5f2   :  { %1890 = vtanh.f32 %v1282_v46 }
 0x5f3   :  { %1892 = vtanh.f32 %v1276_v52 }
 0x5f4   :  { %1894 = vtanh.f32 %v1287_v43 }
 0x5fb   :  { %v1889_v48 = vpop.eup %1888 }
 0x5fc   :  { %v1891_v0 = vpop.eup %1890  ;;  %v1280_v2 = vmul.f32 0.5, %v1889_v48 }
 0x5fd   :  { %v1284_v45 = vmul.f32 0.5, %v1891_v0  ;;  %v1893_v55 = vpop.eup %1892 }
 0x5fe   :  { %v1281_v5 = vadd.f32 0.5, %v1280_v2  ;;  %v1895_v27 = vpop.eup %1894 }
 0x5ff   :  { %v1285_v41 = vadd.f32 0.5, %v1284_v45  ;;  %v1289_v28 = vmul.f32 0.5, %v1895_v27  ;;  %v1830_v45 = vld [vmem:[%s2772_s4] sm:$0xff]   ;;  %v1836_v27 = vld [vmem:[%s2772_s4 + $0x30] sm:$0xff]  }
 0x600   :  { %v1292_v25 = vmul.f32 %v1893_v55, %v1281_v5  ;;  %v1952_v5 = vmov 0.0   ;;  %v1831_v55 = vld [vmem:[%s2772_s4 + $0x8] sm:$0xff]  }
 0x601   :  { %v1291_v62 = vmul.f32 %v1285_v41, %v2504_v51  ;;  %v1290_v29 = vadd.f32 0.5, %v1289_v28  ;;  %v1945_v51 = vld [vmem:[%s2770_s2 + $0xc8] ss:$16 sps:$4 sm:$0xff]   ;;  %v1832_v41 = vld [vmem:[%s2772_s4 + $0x10] sm:$0xff]  }
 0x602   :  { %v1837_v28 = vld [vmem:[%s2772_s4 + $0x38] sm:$0xff]  }
 0x603   :  { %v2670_v26 = vadd.f32 %v1292_v25, %v1291_v62  ;;  %v1833_v25 = vld [vmem:[%s2772_s4 + $0x18] sm:$0xff]   ;;  %v1834_v62 = vld [vmem:[%s2772_s4 + $0x20] sm:$0xff]  }
 0x605   :  { %1896 = vtanh.f32 %v2670_v26 }
 0x60f   :  { %v1897_v30 = vpop.eup %1896 }
 0x610   :  { %v1295_v35 = vmul.f32 %v1897_v30, %v1290_v29  ;;  %v2800_v29 = vld [vmem:[#allocation11_spill] sm:$0xff] }
 0x611   :  { %v1415_v30 = vunpack.c.l.bf16 %v2800_v29 }
 0x612   :  { %v1303_v36 = vpack.c.bf16 %v1295_v35, %v1295_v35  ;;  %v2801_v35 = vld [vmem:[#allocation12_spill] sm:$0xff] }
 0x614   :  { %1337 = vmatmul.mubr.bf16.vlgmr.msra.gmra.mrb[40].mxu0 %v1303_v36  ;;  %1378 = vmatmul.mubr.bf16.vlgmr.msra.gmra.mrb[40].mxu1 %v1303_v36  ;;  %v1417_v36 = vunpack.c.l.bf16 %v2801_v35 }
 0x615   :  { %1421 = vmatpush1.bf16.msra.mxu0 %v2510_v14  ;;  %1462 = vmatpush1.bf16.msra.mxu1 %v2516_v50  ;;  %v1946_v14 = vld [vmem:[%s2770_s2 + $0xe4] ss:$16 sps:$4 sm:$0xff]   ;;  %v1947_v50 = vld [vmem:[%s2770_s2 + $0xec] ss:$16 sps:$4 sm:$0xff]  }
 0x616   :  { %1422 = vmatprep.subr.bf16.mxu0 %v2522_v63  ;;  %1463 = vmatprep.subr.bf16.mxu1 %v2528_v1  ;;  %v1948_v63 = vld [vmem:[%s2770_s2 + $0xe0] ss:$16 sps:$4 sm:$0xff]   ;;  %v1949_v1 = vld [vmem:[%s2770_s2 + $0xe8] ss:$16 sps:$4 sm:$0xff]  }
 0x617   :  { %1452 = vmatprep.mubr.bf16.mxu0 %v2793_v42  ;;  %1493 = vmatprep.mubr.bf16.mxu1 %v2793_v42  ;;  %v1944_v42 = vld [vmem:[%s2770_s2 + $0xc0] ss:$16 sps:$4 sm:$0xff]  }
 0x619   :  { %1423 = vmatpush1.bf16.msra.mxu0 %v2536_v59  ;;  %1464 = vmatpush1.bf16.msra.mxu1 %v2542_v58  ;;  %v2798_v59 = vld [vmem:[#allocation9_spill] sm:$0xff] }
 0x61a   :  { %1424 = vmatprep.subr.bf16.mxu0 %v2548_v60  ;;  %1465 = vmatprep.subr.bf16.mxu1 %v2554_v47  ;;  %v1299_v58 = vunpack.c.l.bf16 %v2798_v59  ;;  %v2799_v60 = vld [vmem:[#allocation10_spill] sm:$0xff] }
 0x61b   :  { %v1301_v47 = vunpack.c.l.bf16 %v2799_v60 }
 0x61d   :  { %1425 = vmatpush1.bf16.msra.mxu0 %v2560_v34  ;;  %1466 = vmatpush1.bf16.msra.mxu1 %v2566_v3 }
 0x61e   :  { %1426 = vmatprep.subr.bf16.mxu0 %v2572_v10  ;;  %1467 = vmatprep.subr.bf16.mxu1 %v2578_v11  ;;  %v1300_v10 = vunpack.c.h.bf16 %v2798_v59  ;;  %v1302_v11 = vunpack.c.h.bf16 %v2799_v60 }
 0x621   :  { %1427 = vmatpush1.bf16.msra.mxu0 %v2584_v12  ;;  %1468 = vmatpush1.bf16.msra.mxu1 %v2590_v13 }
 0x622   :  { %1428 = vmatprep.subr.bf16.mxu0 %v2596_v15  ;;  %1469 = vmatprep.subr.bf16.mxu1 %v2602_v16 }
 0x625   :  { %1429 = vmatpush1.bf16.msra.mxu0 %v2608_v17  ;;  %1470 = vmatpush1.bf16.msra.mxu1 %v2614_v18 }
 0x626   :  { %1430 = vmatprep.subr.bf16.mxu0 %v2620_v19  ;;  %1471 = vmatprep.subr.bf16.mxu1 %v2626_v20 }
 0x629   :  { %1431 = vmatpush1.bf16.msra.mxu0 %v2632_v21  ;;  %1472 = vmatpush1.bf16.msra.mxu1 %v2638_v22 }
 0x62a   :  { %1432 = vmatprep.subr.bf16.mxu0 %v2644_v23  ;;  %1473 = vmatprep.subr.bf16.mxu1 %v2650_v24 }
 0x62d   :  { %1433 = vmatpush1.bf16.msra.mxu0 %v1944_v42  ;;  %1474 = vmatpush1.bf16.msra.mxu1 %v1945_v51 }
 0x62e   :  { %1434 = vmatprep.subr.bf16.mxu0 %v1946_v14  ;;  %1475 = vmatprep.subr.bf16.mxu1 %v1947_v50  ;;  %v1416_v14 = vunpack.c.h.bf16 %v2800_v29  ;;  %v1418_v50 = vunpack.c.h.bf16 %v2801_v35 }
 0x631   :  { %1435 = vmatpush1.bf16.msra.mxu0 %v1948_v63  ;;  %1476 = vmatpush1.bf16.msra.mxu1 %v1949_v1 }
 0x632   :  { %1748 = vmatprep.subr.bf16.mxu0 %v1952_v5 }
 0x6e7   :  { %v1338_v34 = vpop.f32.mrb[40].mxu0  ;;  %v1379_v3 = vpop.f32.mrb[40].mxu1 }
 0x6e8   :  { %v1386_v12 = vadd.f32 %v1338_v34, %v1299_v58  ;;  %v1388_v13 = vadd.f32 %v1379_v3, %v1301_v47  ;;  %v1340_v15 = vpop.f32.mrb[41].mxu0  ;;  %v1381_v16 = vpop.f32.mrb[41].mxu1 }
 0x6e9   :  { %v1387_v17 = vadd.f32 %v1340_v15, %v1300_v10  ;;  %v1389_v18 = vadd.f32 %v1381_v16, %v1302_v11  ;;  %v1342_v19 = vpop.f32.mrb[42].mxu0  ;;  %v1383_v20 = vpop.f32.mrb[42].mxu1 }
 0x6ea   :  { %v1390_v21 = vadd.f32 %v1386_v12, %v2295_v44  ;;  %v1343_v22 = vpop.f32.mrb[43].mxu0  ;;  %v1384_v23 = vpop.f32.mrb[43].mxu1  ;;  %v1392_v38 = vadd.f32 %v1388_v13, %v2303_v57 }
 0x6eb   :  { %v1391_v24 = vadd.f32 %v1387_v17, %v2299_v56  ;;  %v1393_v32 = vadd.f32 %v1389_v18, %v2307_v54 }
 0x6ec   :  { %v1394_v37 = vmul.f32 0.5, %v1390_v21 }
 0x6ed   :  { %v1398_v31 = vmul.f32 0.5, %v1391_v24  ;;  %v1403_v39 = vmul.f32 0.5, %v1393_v32 }
 0x6ee   :  { %1898 = vtanh.f32 %v1394_v37 }
 0x6ef   :  { %1900 = vtanh.f32 %v1398_v31 }
 0x6f0   :  { %1902 = vtanh.f32 %v1392_v38 }
 0x6f1   :  { %1904 = vtanh.f32 %v1403_v39 }
 0x6f8   :  { %v1899_v33 = vpop.eup %1898 }
 0x6f9   :  { %v1901_v40 = vpop.eup %1900  ;;  %v1396_v61 = vmul.f32 0.5, %v1899_v33 }
 0x6fa   :  { %v1400_v8 = vmul.f32 0.5, %v1901_v40  ;;  %v1903_v4 = vpop.eup %1902 }
 0x6fb   :  { %v1397_v9 = vadd.f32 0.5, %v1396_v61  ;;  %v1905_v52 = vpop.eup %1904  ;;  %v1714_v61 = vld [vmem:[%s2773_s5] ss:$0 sm:$0xff] }
 0x6fc   :  { %v1401_v49 = vadd.f32 0.5, %v1400_v8  ;;  %v1405_v53 = vmul.f32 0.5, %v1905_v52 }
 0x6fd   :  { %v1408_v6 = vmul.f32 %v1903_v4, %v1397_v9 }
 0x6fe   :  { %v1407_v7 = vmul.f32 %v1401_v49, %v2670_v26  ;;  %v1406_v43 = vadd.f32 0.5, %v1405_v53  ;;  %v1835_v26 = vld [vmem:[%s2772_s4 + $0x28] sm:$0xff]  }
 0x700   :  { %v2726_v46 = vadd.f32 %v1408_v6, %v1407_v7 }
 0x702   :  { %1906 = vtanh.f32 %v2726_v46 }
 0x70c   :  { %v1907_v48 = vpop.eup %1906 }
 0x70d   :  { %v1411_v0 = vmul.f32 %v1907_v48, %v1406_v43 }
 0x70f   :  { %v1419_v2 = vpack.c.bf16 %v1411_v0, %v1411_v0 }
 0x711   :  { %1453 = vmatmul.mubr.bf16.vlgmr.msra.gmra.mrb[44].mxu0 %v1419_v2  ;;  %1494 = vmatmul.mubr.bf16.vlgmr.msra.gmra.mrb[44].mxu1 %v1419_v2 }
 0x712   :  { %1749 = vmatpush3.bf16.msra.mxu0 %v1830_v45  ;;  %1764 = vmatprep.mubr.msk.bf16.mxu0 %vm1953_vm1, %v1952_v5 }
 0x713   :  { %1750 = vmatprep.subr.bf16.mxu0 %v1952_v5 }
 0x716   :  { %1751 = vmatpush3.bf16.msra.mxu0 %v1831_v55 }
 0x717   :  { %1752 = vmatprep.subr.bf16.mxu0 %v1952_v5 }
 0x71a   :  { %1753 = vmatpush3.bf16.msra.mxu0 %v1832_v41 }
 0x71b   :  { %1754 = vmatprep.subr.bf16.mxu0 %v1952_v5 }
 0x71e   :  { %1755 = vmatpush3.bf16.msra.mxu0 %v1833_v25 }
 0x71f   :  { %1756 = vmatprep.subr.bf16.mxu0 %v1952_v5 }
 0x722   :  { %1757 = vmatpush3.bf16.msra.mxu0 %v1834_v62 }
 0x723   :  { %1758 = vmatprep.subr.bf16.mxu0 %v1952_v5 }
 0x726   :  { %1759 = vmatpush3.bf16.msra.mxu0 %v1835_v26 }
 0x727   :  { %1760 = vmatprep.subr.bf16.mxu0 %v1952_v5 }
 0x72a   :  { %1761 = vmatpush3.bf16.msra.mxu0 %v1836_v27 }
 0x72b   :  { %1762 = vmatprep.subr.bf16.mxu0 %v1952_v5 }
 0x72e   :  { %1763 = vmatpush3.bf16.msra.mxu0 %v1837_v28 }
 0x7e4   :  { %v1454_v42 = vpop.f32.mrb[44].mxu0  ;;  %v1495_v51 = vpop.f32.mrb[44].mxu1 }
 0x7e5   :  { %v1502_v63 = vadd.f32 %v1454_v42, %v1415_v30  ;;  %v1504_v1 = vadd.f32 %v1495_v51, %v1417_v36  ;;  %v1456_v59 = vpop.f32.mrb[45].mxu0  ;;  %v1497_v58 = vpop.f32.mrb[45].mxu1 }
 0x7e6   :  { %v1503_v60 = vadd.f32 %v1456_v59, %v1416_v14  ;;  %v1505_v47 = vadd.f32 %v1497_v58, %v1418_v50  ;;  %v1458_v34 = vpop.f32.mrb[46].mxu0  ;;  %v1499_v3 = vpop.f32.mrb[46].mxu1 }
 0x7e7   :  { %v1506_v10 = vadd.f32 %v1502_v63, %v2295_v44  ;;  %v1459_v11 = vpop.f32.mrb[47].mxu0  ;;  %v1500_v12 = vpop.f32.mrb[47].mxu1  ;;  %v1508_v17 = vadd.f32 %v1504_v1, %v2303_v57 }
 0x7e8   :  { %v1507_v13 = vadd.f32 %v1503_v60, %v2299_v56  ;;  %v1509_v18 = vadd.f32 %v1505_v47, %v2307_v54 }
 0x7e9   :  { %v1510_v15 = vmul.f32 0.5, %v1506_v10 }
 0x7ea   :  { %v1514_v16 = vmul.f32 0.5, %v1507_v13  ;;  %v1519_v19 = vmul.f32 0.5, %v1509_v18 }
 0x7eb   :  { %1908 = vtanh.f32 %v1510_v15 }
 0x7ec   :  { %1910 = vtanh.f32 %v1514_v16 }
 0x7ed   :  { %1912 = vtanh.f32 %v1508_v17 }
 0x7ee   :  { %1914 = vtanh.f32 %v1519_v19 }
 0x7f5   :  { %v1909_v20 = vpop.eup %1908 }
 0x7f6   :  { %v1911_v21 = vpop.eup %1910  ;;  %v1512_v22 = vmul.f32 0.5, %v1909_v20 }
 0x7f7   :  { %v1516_v23 = vmul.f32 0.5, %v1911_v21  ;;  %v1913_v24 = vpop.eup %1912 }
 0x7f8   :  { %v1513_v44 = vadd.f32 0.5, %v1512_v22  ;;  %v1915_v32 = vpop.eup %1914 }
 0x7f9   :  { %v1517_v37 = vadd.f32 0.5, %v1516_v23  ;;  %v1521_v57 = vmul.f32 0.5, %v1915_v32 }
 0x7fa   :  { %v1524_v31 = vmul.f32 %v1913_v24, %v1513_v44 }
 0x7fb   :  { %v1523_v56 = vmul.f32 %v1517_v37, %v2726_v46  ;;  %v1522_v39 = vadd.f32 0.5, %v1521_v57 }
 0x7fd   :  { %v1525_v38 = vadd.f32 %v1524_v31, %v1523_v56 }
 0x7ff   :  { %1916 = vtanh.f32 %v1525_v38 }
 0x809   :  { %v1917_v33 = vpop.eup %1916 }
 0x80a   :  { %v1527_v40 = vmul.f32 %v1917_v33, %v1522_v39 }
 0x80c   :  { %v1533_v54 = vpack.c.bf16 %v1527_v40, %v1527_v40 }
 0x80e   :  { %1765 = vmatmul.mubr.bf16.vlgmr.msra.gmra.mrb[48].mxu0 %v1533_v54 }
 0x8e1   :  { %v1639_v8 = vpop.f32.mrb[48].mxu0 }
 0x8e2   :  { %v1640_v9 = vadd.f32 %v1714_v61, %v1639_v8  ;;  %v1766_v4 = vpop.f32.mrb[49].mxu0 }
 0x8e3   :  { %v1642_v49 = vpop.f32.mrb[50].mxu0 }
 0x8e4   :  { %1645 = vst [vmem:[%s2774_s6] sm:$0xff] %v1640_v9  ;;  %v1767_v6 = vpop.f32.mrb[51].mxu0 }

</bundles_post_ra>
